<compile_context>
chip_gen: v7x
topology: tpu7x:2x2x1
jax: 0.10.0
libtpu: 0.0.40
codegen_flags: <defaults>
</compile_context>

<pallas_src>
import functools

import jax
import jax.numpy as jnp
from jax.experimental import pallas as pl
from jax.experimental.pallas import tpu as pltpu

time_window = 5


def _nearest_upsample_kernel(x_ref, r_ref, o_ref, *, precision):
    # x_ref: (Rt, g*W)   r_ref: (g*W, g*s*s*W)   o_ref: (Rt, g*s*s*W)
    xv = x_ref[...].astype(r_ref.dtype)  # no-op for float inputs; exact for narrow ints
    o_ref[...] = jnp.dot(
        xv, r_ref[...],
        preferred_element_type=jnp.float32,
        precision=precision,
    ).astype(o_ref.dtype)


def _pick_group(H, W, target=128):
    """Smallest divisor g of H with g*W >= target (keeps lane dim ~128-256)."""
    if W >= target:
        return 1
    for g in range(1, H + 1):
        if H % g == 0 and g * W >= target:
            return g
    return H


def _pick_row_tile(total_rows, row_in_bytes, row_out_bytes, r_bytes, align):
    """Row tile: ~2 MiB output blocks, double-buffered footprint under ~12 MiB,
    sublane-aligned, dividing total_rows, and >=2 grid steps when possible."""
    budget = 12 * 2**20          # 2*(in+out) + R must fit every generation's scoped VMEM
    target_out = 2 * 2**20       # roofline-sized output blocks
    per_row = row_in_bytes + row_out_bytes
    cap = max(align, (budget - r_bytes) // (2 * per_row))
    want = max(align, min(cap, max(1, target_out // max(1, row_out_bytes)), total_rows))
    # keep at least 2 sizable parallel blocks so both v7x TensorCores get work
    if total_rows >= 2 * align and want > total_rows // 2:
        want = total_rows // 2
    t = (want // align) * align
    while t >= align:
        if total_rows % t == 0:
            return t
        t -= align
    return total_rows            # full extent is always a legal block shape


def sample_forward(x, scale_factor=2, mode="nearest", size=None):
    """Pallas implementation of Sample.forward. x: (T, B, C, H, W)."""
    if size is not None or mode not in ("nearest", "nearset"):
        # TODO(synk): only mode='nearest' with an integer scale_factor is implemented
        # (bilinear / size= forms of nn.Upsample have no clean equivalent here).
        raise NotImplementedError("only nearest-neighbor integer scale_factor upsampling")
    s = int(scale_factor)
    assert s >= 1 and s == scale_factor

    T, B, C, H, W = x.shape

    # Compute dtype for the MXU path. The 0/1 matmul is exact for f32 (with HIGHEST)
    # and bf16 (single nonzero term per column); narrow ints are exact through f32.
    if jnp.issubdtype(x.dtype, jnp.floating):
        if x.dtype in (jnp.dtype(jnp.float32), jnp.dtype(jnp.bfloat16)):
            compute_dtype = jnp.dtype(x.dtype)
        else:
            compute_dtype = jnp.dtype(jnp.float32)
    elif jnp.issubdtype(x.dtype, jnp.integer) and jnp.dtype(x.dtype).itemsize <= 2:
        compute_dtype = jnp.dtype(jnp.float32)
    else:
        # TODO(synk): wide-integer / bool inputs would need a non-MXU gather path.
        raise NotImplementedError(f"unsupported dtype {x.dtype}")
    precision = (jax.lax.Precision.HIGHEST
                 if compute_dtype == jnp.dtype(jnp.float32)
                 else jax.lax.Precision.DEFAULT)

    # Fold g H-rows into the lane axis (g | H keeps each group inside one channel,
    # so the output view stays a contiguous, metadata-only reshape).
    g = _pick_group(H, W)
    gW = g * W
    gOW = g * s * s * W
    total_rows = (T * B * C * H) // g

    # Free, contiguous view (no transposes, no extra HBM passes).
    x2 = x.reshape(total_rows, gW)

    # Constant 0/1 expansion matrix fusing BOTH the W- and H-direction repeats:
    #   out_group[hh_local*(W*s) + ww] = in_group[(hh_local//s)*W + (ww//s)]
    j = jnp.arange(gOW)
    src = ((j // (W * s)) // s) * W + (j % (W * s)) // s                 # (gOW,)
    R = (src[None, :] == jnp.arange(gW)[:, None]).astype(compute_dtype)  # (gW, gOW)

    itemsize = jnp.dtype(x.dtype).itemsize
    align = {4: 8, 2: 16, 1: 32}.get(itemsize, 8)   # sublane packing per dtype width
    r_bytes = gW * gOW * jnp.dtype(compute_dtype).itemsize
    Rt = _pick_row_tile(total_rows, gW * itemsize, gOW * itemsize, r_bytes, align)
    grid = (total_rows // Rt,)

    footprint = 2 * Rt * (gW + gOW) * itemsize + r_bytes
    vmem_limit = None if footprint <= 12 * 2**20 else min(2 * footprint, 48 * 2**20)

    kernel = functools.partial(_nearest_upsample_kernel, precision=precision)

    out2 = pl.pallas_call(
        kernel,
        out_shape=jax.ShapeDtypeStruct((total_rows, gOW), x.dtype),
        grid=grid,
        in_specs=[
            pl.BlockSpec((Rt, gW), lambda i: (i, 0)),
            # Constant block index -> DMA'd once, then reused across all grid steps.
            pl.BlockSpec((gW, gOW), lambda i: (0, 0)),
        ],
        out_specs=pl.BlockSpec((Rt, gOW), lambda i: (i, 0)),
        compiler_params=pltpu.CompilerParams(
            dimension_semantics=("parallel",),
            vmem_limit_bytes=vmem_limit,
        ),
        cost_estimate=pl.CostEstimate(
            flops=2 * total_rows * gW * gOW,
            transcendentals=0,
            bytes_accessed=total_rows * (gW + gOW) * itemsize + r_bytes,
        ),
    )(x2, R)

    # (total_rows, g*s*s*W) row-major is bit-identical memory layout to
    # (T, B, C, H*s, W*s): this reshape is metadata-only (no transpose, no HBM pass).
    return out2.reshape(T, B, C, H * s, W * s)


def sample_ref(x, scale_factor=2):
    """Pure-JAX reference mirroring nn.Upsample(scale_factor=s, mode='nearest')."""
    s = int(scale_factor)
    return jnp.repeat(jnp.repeat(x, s, axis=3), s, axis=4)


if __name__ == "__main__":
    key = jax.random.PRNGKey(0)
    T, B, C, H, W = time_window, 2, 4, 16, 16
    s = 2
    x = jax.random.normal(key, (T, B, C, H, W), dtype=jnp.float32)

    out = sample_forward(x, scale_factor=s, mode="nearest")
    out = jax.block_until_ready(out)

    ref = sample_ref(x, scale_factor=s)

    assert out.shape == (T, B, C, H * s, W * s), out.shape
    assert out.dtype == x.dtype, out.dtype
    assert bool(jnp.allclose(out, ref, rtol=0.0, atol=1e-6)), "Pallas Sample mismatch vs reference"

    print("KERNEL_OK")
</pallas_src>

<mosaic_0001>
module attributes {stable_mosaic.version = 11 : i64} {
  func.func @_nearest_upsample_kernel(%arg0: i32, %arg1: memref<40x128xf32, #tpu.memory_space<vmem>>, %arg2: memref<128x512xf32, #tpu.memory_space<vmem>>, %arg3: memref<40x512xf32, #tpu.memory_space<vmem>>) attributes {dimension_semantics = [#tpu.dimension_semantics<parallel>], iteration_bounds = array<i64: 2>, scalar_prefetch = 0 : i64, scratch_operands = 0 : i64, tpu.core_type = #tpu.core_type<tc>, window_params = [{transform_indices = @transform_0, window_bounds = array<i64: 40, 128>}, {pipeline_mode = #tpu.pipeline_mode<synchronous>, transform_indices = @transform_1, window_bounds = array<i64: 128, 512>}, {transform_indices = @transform_2, window_bounds = array<i64: 40, 512>}]} {
    %c0 = arith.constant 0 : index
    %c0_0 = arith.constant 0 : index
    %0 = vector.load %arg1[%c0, %c0_0] : memref<40x128xf32, #tpu.memory_space<vmem>>, vector<40x128xf32>
    %c0_1 = arith.constant 0 : index
    %c0_2 = arith.constant 0 : index
    %1 = vector.load %arg2[%c0_1, %c0_2] : memref<128x512xf32, #tpu.memory_space<vmem>>, vector<128x512xf32>
    %cst = arith.constant dense<0.000000e+00> : vector<40x512xf32>
    %2 = tpu.matmul %0, %1, %cst {dimension_numbers = #tpu.dot_dimension_numbers<[1], [0], [0], [1], [0, 0, 1, 1], [], []>, precision = #tpu.contract_precision<fp32>} : vector<40x128xf32>, vector<128x512xf32>, vector<40x512xf32> -> vector<40x512xf32>
    %c0_3 = arith.constant 0 : index
    %c0_4 = arith.constant 0 : index
    %3 = vector.load %arg3[%c0_3, %c0_4] : memref<40x512xf32, #tpu.memory_space<vmem>>, vector<40x512xf32>
    tpu.vector_store %arg3[%c0_3, %c0_4], %2 {strides = array<i32>} : memref<40x512xf32, #tpu.memory_space<vmem>>, vector<40x512xf32>,
    return
  }
  func.func @transform_0(%arg0: i32) -> (i32, i32) {
    %c0_i32 = arith.constant 0 : i32
    %c0_i32_0 = arith.constant 0 : i32
    return %arg0, %c0_i32 : i32, i32
  }
  func.func @transform_1(%arg0: i32) -> (i32, i32) {
    %c0_i32 = arith.constant 0 : i32
    %c0_i32_0 = arith.constant 0 : i32
    %c0_i32_1 = arith.constant 0 : i32
    return %c0_i32, %c0_i32_0 : i32, i32
  }
  func.func @transform_2(%arg0: i32) -> (i32, i32) {
    %c0_i32 = arith.constant 0 : i32
    %c0_i32_0 = arith.constant 0 : i32
    return %arg0, %c0_i32 : i32, i32
  }
}

</mosaic_0001>

<bundles_post_ra>
// kernel: tpu_custom_call.1
= control target key start
LH: loop header
LB: loop body
LE: loop exit
PB: predicated region body
PF: predicated region fallthrough
CT: control target
= control target key end

     0   :  { %7 = vsyncpa [#allocation3], 0  ;;  %s4401_s0 = inlined_call_operand.hbm [shape: f32[80,128], index: 0, kind: input, shape index: {}]   ;;  %s4402_s1 = inlined_call_operand.hbm [shape: f32[128,512], index: 1, kind: input, shape index: {}]   ;;  %s4403_s2 = inlined_call_operand.hbm [shape: f32[80,512], index: 2, kind: output, shape index: {}]  }
   0x1   :  { %9 = vsyncpa [#allocation3 + $0x1], 0 }
   0x2   :  { %10 = vsyncpa [#allocation6], 0 }
   0x3   :  { %11 = vsyncpa [#allocation4], 0 }
   0x4   :  { %13 = vsyncpa [#allocation4 + $0x1], 0  ;;  %s3189_s9 = smov 0   ;;  %s3191_s10 = smov 0  }
   0x5   :  { %s3193_s11 = smov 0   ;;  %s3195_s12 = smov 0  }
   0x6 LB: > { %s3210_s13 = sadd.s32 4294967295, %s3162_s12   ;;  %s2468_s14 = sadd.s32 4294967294, %s3162_s12   ;;  %s3162_s12 = sphi %s3195_s12, %s4921_s12   ;;  %s3158_s11 = sphi %s3193_s11, %s4920_s11   ;;  %s3154_s10 = sphi %s3191_s10, %s4919_s10   ;;  %s3150_s9 = sphi %s3189_s9, %s4918_s9  }
   0x7   : > { %p39_p0 = scmp.ne.s32.totalorder %s3154_s10, %s3150_s9  ;;  %p4404_p1 = scmp.eq.s32.totalorder %s3210_s13, 0 }
   0x8   : > { %p90_p3 = scmp.eq.s32.totalorder %s2468_s14, 1  ;;  %p2469_p5 = scmp.ge.s32.totalorder %s3162_s12, 1 }
   0x9   : > { %p3219_p4 = por %p4404_p1, %p39_p0  ;;  %p97_p7 = scmp.lt.s32.totalorder %s3162_s12, 3 }
   0xa   : > { %p3224_p6 = por %p90_p3, %p39_p0  ;;  %s3164_s18 = smov [#allocation5]  }
   0xb   : > { %s4635_s15 = scalar_select %p3219_p4, 1, 0 }
   0xc   : > { %s4636_s16 = scalar_select %p3224_p6, 1, 0 }
   0xd   : > { %p3229_p8 = pnand %p2469_p5, %p97_p7  ;;  %s109_s19 = sshll.u32 %s3164_s18, 4  ;;  %s3233_s19 = int_to_ptr.vmem [resolvable:$true] %s109_s19 }
   0xe   : > { %s3245_s21 = sadd.s32 1, %s3162_s12   ;;  %s26_s22 = sadd.s32 1, %s3158_s11 }
   0xf   : > { %s4637_s17 = scalar_select %p3229_p8, 1, 0 }
  0x10   : > { %p2978_p9 = pneg %p3229_p8  ;;  %s23_s23 = ssub.s32 %s3162_s12, %s3245_s21 }
  0x11   : > { %s3034_s26 = scalar_lea.hbm %s4402_s1, 8192 }
  0x12   : > { %p3240_p11 = pnand %p2978_p9, %p4404_p1  ;;  %p3035_p12 = scmp.ne.s32.totalorder %s4402_s1, %s3034_s26 }
  0x13   : > { %p3041_p5 = scmp.lt.u32.totalorder %s3034_s26, %s4402_s1 }
  0x14   : > { %p3036_p13 = pneg %p3240_p11 }
  0x16   : > { %p3037_p0 = pnand %p3036_p13, %p3035_p12 }
  0x18   : > { %p3038_p3 = pneg %p3037_p0 }
  0x1a   : > { %p3043_p7 = pnand %p3041_p5, %p3038_p3 }
  0x1c   : > { %3046 = shalt.err (!%p3043_p7)
}
  0x1d   : > { %s3047_s3 = scalar_lea.vmem %s3233_s19, 8192  ;;  %p3055_p2 = scmp.lt.s32.totalorder %s3233_s19, %s3233_s19 }
  0x1e   : > { %p3048_p9 = scmp.ne.s32.totalorder %s3233_s19, %s3047_s3  ;;  %p3056_p6 = scmp.lt.s32.totalorder %s3047_s3, %s3047_s3 }
  0x20   : > { %p3050_p10 = pnand %p3048_p9, %p3036_p13  ;;  %p3057_p4 = por %p3056_p6, %p3055_p2 }
  0x22   : > { %p3051_p1 = pneg %p3050_p10 }
  0x24   : > { %p3058_p8 = pnand %p3057_p4, %p3051_p1 }
  0x26   : > { %3061 = shalt.err (!%p3058_p8)
}
  0x27   : > { %s3165_s4 = smov 512   ;;  %s3166_s5 = smov 32  }
  0x28   : > { %2981 = dma.hbm_to_vmem [thread:$0]  (!%p3240_p11), %s4402_s1, 8192, %s3233_s19, [#allocation6], %s3165_s4, %s3165_s4, %s3166_s5  }
  0x29   : > { %p24_p2 = scmp.eq.s32.totalorder %s23_s23, 0  ;;  %p33_p1 = scmp.ne.s32.totalorder %s3158_s11, %s3154_s10 }
  0x2a   : > { %p34_p4 = scmp.eq.s32.totalorder %s3162_s12, 0  ;;  %p2991_p6 = scmp.lt.s32.totalorder %s3162_s12, 2 }
  0x2b   : > { %s3276_s8 = scalar_select %p24_p2, %s3158_s11, %s26_s22  }
  0x2c   : > { %p35_p8 = por %p34_p4, %p33_p1  ;;  %p4639_p10 = scmp.eq.s32.totalorder %s3210_s13, 1 }
  0x2d   : > { %s123_s18 = sand.u32 1, %s3158_s11   ;;  %s2479_s24 = smul.u32 640, %s3162_s12 }
  0x2e   : > { %p3280_p12 = por %p4639_p10, %p33_p1  ;;  %s2967_s25 = smul.u32 40, %s123_s18 }
  0x2f   : > { %s3289_s27 = scalar_lea.hbm %s4401_s0, %s2479_s24  ;;  %p3291_p11 = pnand %p2991_p6, %p35_p8 }
  0x30   : > { %s127_s22 = scalar_lea.vmem [#allocation2], %s2967_s25  ;;  %s3297_s28 = scalar_lea.sflag [#allocation3], %s123_s18 }
  0x31   : > { %s134_s23 = sshll.u32 %s127_s22, 4  ;;  %s3062_s29 = scalar_lea.hbm %s3289_s27, 640  ;;  %s3295_s23 = int_to_ptr.vmem [resolvable:$true] %s134_s23 }
  0x32   : > { %p3063_p13 = scmp.ne.s32.totalorder %s3289_s27, %s3062_s29  ;;  %p3064_p0 = pneg %p3291_p11 }
  0x33   : > { %s3067_s4 = scalar_lea.hbm %s4401_s0, 1280  ;;  %p3068_p7 = scmp.lt.u32.totalorder %s3289_s27, %s4401_s0 }
  0x34   : > { %p3065_p3 = pnand %p3064_p0, %p3063_p13  ;;  %p3069_p9 = scmp.lt.u32.totalorder %s3067_s4, %s3062_s29 }
  0x35   : > { %p3071_p1 = scmp.lt.u32.totalorder %s3062_s29, %s3289_s27 }
  0x36   : > { %p3066_p5 = pneg %p3065_p3  ;;  %p3070_p2 = por %p3069_p9, %p3068_p7 }
  0x38   : > { %p3072_p4 = por %p3071_p1, %p3070_p2 }
  0x3a   : > { %p3073_p6 = pnand %p3072_p4, %p3066_p5 }
  0x3c   : > { %3076 = shalt.err (!%p3073_p6)
}
  0x3d   : > { %s3077_s7 = scalar_lea.vmem %s3295_s23, 640  ;;  %s3167_s18 = smov [#allocation2]  }
  0x3e   : > { %p3078_p8 = scmp.ne.s32.totalorder %s3295_s23, %s3077_s7  ;;  %s3082_s24 = sshll.u32 %s3167_s18, 4  ;;  %s3083_s24 = int_to_ptr.vmem [resolvable:$false] %s3082_s24 }
  0x3f   : > { %s3084_s25 = scalar_lea.vmem %s3083_s24, 1280  ;;  %p3085_p3 = scmp.lt.s32.totalorder %s3295_s23, %s3083_s24 }
  0x40   : > { %p3080_p10 = pnand %p3078_p8, %p3064_p0  ;;  %p3086_p7 = scmp.lt.s32.totalorder %s3084_s25, %s3077_s7 }
  0x42   : > { %p3081_p13 = pneg %p3080_p10  ;;  %p3087_p9 = por %p3086_p7, %p3085_p3 }
  0x44   : > { %p3088_p2 = pnand %p3087_p9, %p3081_p13 }
  0x46   : > { %3091 = shalt.err (!%p3088_p2)
}
  0x47   : > { %s3168_s20 = smov 128   ;;  %s3169_s26 = smov 8  }
  0x48   : > { %2985 = dma.hbm_to_vmem [thread:$0]  (!%p3291_p11), %s3289_s27, 640, %s3295_s23, %s3297_s28, %s3168_s20, %s3168_s20, %s3169_s26  }
  0x49   : > { %p4642_p0 = scmp.ne.s32.totalorder %s4637_s17, 0 }
  0x4b   : > { %146 = sbr.rel (%p4642_p0) target bundleno = 577 (0x241), region = 28 }
  0x52   : > { %s3328_s22 = sand.u32 1, %s3154_s10   ;;  %p4643_p5 = scmp.ne.s32.totalorder %s4635_s15, 0 }
  0x53   : > { %s2968_s29 = smul.u32 40, %s3328_s22  ;;  %s149_s30 = scalar_lea.sflag [#allocation3], %s3328_s22 }
  0x55   : > { %s3332_s3 = scalar_lea.vmem [#allocation2], %s2968_s29 }
  0x56   : > { %3137 = dma.done.wait (%p4643_p5), %s149_s30, 640  }
  0x57   : > { %3139 = vsyncadd (%p4643_p5), %s149_s30, 4294966656  ;;  %p4644_p11 = scmp.eq.s32.totalorder %s3210_s13, 0 }
  0x59   : > { %3141 = dma.done.wait (%p4644_p11), [#allocation6], 8192   ;;  %p4645_p1 = pmov %p4644_p11 }
  0x5a   : > { %v4407_v0 = vmov 0.0   ;;  %v185_v1 = vld [vmem:[#allocation5 + $0x8] sm:$0xff]  ;;  %v187_v3 = vld [vmem:[#allocation5 + $0x18] sm:$0xff]  ;;  %v184_v8 = vld [vmem:[#allocation5] sm:$0xff]  ;;  %s2969_s15 = smul.u32 160, %s3328_s22  ;;  %s3171_s6 = smov [#allocation7]  }
  0x5b   : > { %3143 = vsyncadd (%p4645_p1), [#allocation6], 4294959104  ;;  %344 = vmatprep.mubr.f32.mxu0 %v4407_v0  ;;  %1395 = vmatprep.mubr.f32.mxu1 %v4407_v0  ;;  %v189_v2 = vld [vmem:[#allocation5 + $0x28] sm:$0xff]  ;;  %v248_v4 = vand.u32 4294901760, %v185_v1  ;;  %v191_v6 = vld [vmem:[#allocation5 + $0x38] sm:$0xff]  ;;  %v1299_v7 = vand.u32 4294901760, %v187_v3 }
  0x5c   : > { %v252_v5 = vand.u32 4294901760, %v189_v2  ;;  %v188_v9 = vld [vmem:[#allocation5 + $0x20] sm:$0xff]  ;;  %v1303_v10 = vand.u32 4294901760, %v191_v6  ;;  %v250_v11 = vand.u32 4294901760, %v184_v8  ;;  %v186_v13 = vld [vmem:[#allocation5 + $0x10] sm:$0xff]  ;;  %v193_v15 = vld [vmem:[#allocation5 + $0x48] sm:$0xff] }
  0x5d   : > { %v254_v12 = vand.u32 4294901760, %v188_v9  ;;  %v190_v14 = vld [vmem:[#allocation5 + $0x30] sm:$0xff]  ;;  %v3346_v17 = vsub.f32 %v185_v1, %v248_v4  ;;  %v3350_v19 = vsub.f32 %v187_v3, %v1299_v7  ;;  %v197_v20 = vld [vmem:[#allocation5 + $0x68] sm:$0xff]  ;;  %v195_v21 = vld [vmem:[#allocation5 + $0x58] sm:$0xff]  ;;  %v1301_v29 = vand.u32 4294901760, %v186_v13  ;;  %s4328_s17 = scalar_lea.vmem [#allocation7], %s2969_s15 }
  0x5e   : > { %v3344_v16 = vpack.c.bf16 %v252_v5, %v248_v4  ;;  %v3348_v18 = vsub.f32 %v189_v2, %v252_v5  ;;  %v199_v22 = vld [vmem:[#allocation5 + $0x78] sm:$0xff]  ;;  %v3352_v23 = vpack.c.bf16 %v1303_v10, %v1299_v7  ;;  %v3354_v24 = vsub.f32 %v191_v6, %v1303_v10  ;;  %v192_v27 = vld [vmem:[#allocation5 + $0x40] sm:$0xff]  ;;  %v194_v37 = vld [vmem:[#allocation5 + $0x50] sm:$0xff]  ;;  %s2482_s27 = smul.u32 2560, %s3210_s13  ;;  %s2385_s19 = sshll.u32 %s4328_s17, 4  ;;  %s4353_s19 = int_to_ptr.vmem [resolvable:$true] %s2385_s19 }
  0x5f   : > { %4647 = vst [vmem:[#allocation12_spill] sm:$0xff] %v3346_v17  ;;  %4649 = vst [vmem:[#allocation14_spill] sm:$0xff] %v3350_v19  ;;  %v3356_v25 = vpack.c.bf16 %v254_v12, %v250_v11  ;;  %v3358_v26 = vsub.f32 %v184_v8, %v250_v11  ;;  %v3361_v28 = vsub.f32 %v188_v9, %v254_v12  ;;  %v1305_v30 = vand.u32 4294901760, %v190_v14  ;;  %v196_v32 = vld [vmem:[#allocation5 + $0x60] sm:$0xff]  ;;  %v198_v38 = vld [vmem:[#allocation5 + $0x70] sm:$0xff]  ;;  %s2371_s13 = scalar_lea.sflag [#allocation4], %s3328_s22 }
  0x60   : > { %4646 = vst [vmem:[#allocation11_spill] sm:$0xff] %v3344_v16  ;;  %4648 = vst [vmem:[#allocation13_spill] sm:$0xff] %v3348_v18  ;;  %2484 = vmatprep.subr.bf16.mxu0 %v3344_v16  ;;  %v256_v31 = vand.u32 4294901760, %v193_v15  ;;  %2676 = vmatprep.subr.bf16.mxu1 %v3352_v23  ;;  %v260_v33 = vand.u32 4294901760, %v197_v20  ;;  %v1307_v34 = vand.u32 4294901760, %v195_v21  ;;  %v1311_v35 = vand.u32 4294901760, %v199_v22  ;;  %s4351_s4 = scalar_lea.hbm %s4403_s2, %s2482_s27 }
  0x61   : > { %4650 = vst [vmem:[#allocation15_spill] sm:$0xff] %v3352_v23  ;;  %4651 = vst [vmem:[#allocation16_spill] sm:$0xff] %v3354_v24  ;;  %2486 = vmatpush1.bf16.msra.mxu0 %v3356_v25  ;;  %v258_v36 = vand.u32 4294901760, %v192_v27  ;;  %v3365_v39 = vpack.c.bf16 %v1305_v30, %v1301_v29  ;;  %v3367_v40 = vsub.f32 %v186_v13, %v1301_v29  ;;  %v201_v43 = vld [vmem:[#allocation5 + $0x88] sm:$0xff]  ;;  %v203_v45 = vld [vmem:[#allocation5 + $0x98] sm:$0xff]  ;;  %v262_v52 = vand.u32 4294901760, %v196_v32 }
  0x62   : > { %4652 = vst [vmem:[#allocation17_spill] sm:$0xff] %v3356_v25  ;;  %4653 = vst [vmem:[#allocation18_spill] sm:$0xff] %v3358_v26  ;;  %v3369_v41 = vsub.f32 %v190_v14, %v1305_v30  ;;  %v3371_v42 = vsub.f32 %v193_v15, %v256_v31  ;;  %v205_v44 = vld [vmem:[#allocation5 + $0xa8] sm:$0xff]  ;;  %v3373_v46 = vpack.c.bf16 %v260_v33, %v256_v31  ;;  %v207_v50 = vld [vmem:[#allocation5 + $0xb8] sm:$0xff]  ;;  %v1309_v54 = vand.u32 4294901760, %v194_v37  ;;  %s3092_s5 = scalar_lea.vmem %s4353_s19, 2560 }
  0x63   : > { %4654 = vst [vmem:[#allocation19_spill] sm:$0xff] %v3361_v28  ;;  %4655 = vst [vmem:[#allocation20_spill] sm:$0xff] %v3365_v39  ;;  %v3375_v47 = vsub.f32 %v197_v20, %v260_v33  ;;  %v3377_v48 = vpack.c.bf16 %v1311_v35, %v1307_v34  ;;  %v3379_v49 = vsub.f32 %v195_v21, %v1307_v34  ;;  %2678 = vmatpush1.bf16.msra.mxu1 %v3365_v39  ;;  %v200_v59 = vld [vmem:[#allocation5 + $0x80] sm:$0xff]  ;;  %v202_v2 = vld [vmem:[#allocation5 + $0x90] sm:$0xff]  ;;  %p3093_p4 = scmp.ne.s32.totalorder %s4353_s19, %s3092_s5  ;;  %s3096_s7 = sshll.u32 %s3171_s6, 4  ;;  %s3097_s7 = int_to_ptr.vmem [resolvable:$false] %s3096_s7 }
  0x64   : > { %4656 = vst [vmem:[#allocation21_spill] sm:$0xff] %v3367_v40  ;;  %4657 = vst [vmem:[#allocation22_spill] sm:$0xff] %v3369_v41  ;;  %v3382_v51 = vsub.f32 %v199_v22, %v1311_v35  ;;  %v3384_v53 = vsub.f32 %v192_v27, %v258_v36  ;;  %2488 = vmatprep.subr.bf16.mxu0 %v3373_v46  ;;  %v1313_v55 = vand.u32 4294901760, %v198_v38  ;;  %v264_v56 = vand.u32 4294901760, %v201_v43  ;;  %v204_v60 = vld [vmem:[#allocation5 + $0xa0] sm:$0xff]  ;;  %v206_v3 = vld [vmem:[#allocation5 + $0xb0] sm:$0xff]  ;;  %p3099_p10 = scmp.lt.s32.totalorder %s4353_s19, %s3097_s7 }
  0x65   : > { %4658 = vst [vmem:[#allocation23_spill] sm:$0xff] %v3373_v46  ;;  %4659 = vst [vmem:[#allocation24_spill] sm:$0xff] %v3377_v48  ;;  %2680 = vmatprep.subr.bf16.mxu1 %v3377_v48  ;;  %v268_v57 = vand.u32 4294901760, %v205_v44  ;;  %v1315_v58 = vand.u32 4294901760, %v203_v45  ;;  %v3388_v61 = vpack.c.bf16 %v262_v52, %v258_v36  ;;  %v3390_v62 = vsub.f32 %v196_v32, %v262_v52  ;;  %v209_v4 = vld [vmem:[#allocation5 + $0xc8] sm:$0xff]  ;;  %v211_v10 = vld [vmem:[#allocation5 + $0xd8] sm:$0xff]  ;;  %p3094_p6 = pnand %p3093_p4, %p3280_p12 }
  0x66   : > { %v3392_v63 = vsub.f32 %v194_v37, %v1309_v54  ;;  %v1319_v1 = vand.u32 4294901760, %v207_v50  ;;  %v3394_v5 = vpack.c.bf16 %v1313_v55, %v1309_v54  ;;  %v3396_v6 = vsub.f32 %v198_v38, %v1313_v55  ;;  %v213_v9 = vld [vmem:[#allocation5 + $0xe8] sm:$0xff]  ;;  %v215_v11 = vld [vmem:[#allocation5 + $0xf8] sm:$0xff]  ;;  %v208_v33 = vld [vmem:[#allocation5 + $0xc0] sm:$0xff]  ;;  %s3098_s18 = scalar_lea.vmem %s3097_s7, 5120 }
  0x67   : > { %4660 = vst [vmem:[#allocation25_spill] sm:$0xff] %v3388_v61  ;;  %v3398_v7 = vpack.c.bf16 %v268_v57, %v264_v56  ;;  %v3400_v8 = vsub.f32 %v201_v43, %v264_v56  ;;  %2490 = vmatpush1.bf16.msra.mxu0 %v3388_v61  ;;  %v3403_v12 = vsub.f32 %v205_v44, %v268_v57  ;;  %v266_v20 = vand.u32 4294901760, %v200_v59  ;;  %v212_v38 = vld [vmem:[#allocation5 + $0xe0] sm:$0xff]  ;;  %v210_v43 = vld [vmem:[#allocation5 + $0xd0] sm:$0xff]  ;;  %v217_v55 = vld [vmem:[#allocation5 + $0x108] sm:$0xff]  ;;  %p3095_p8 = pneg %p3094_p6  ;;  %p3100_p13 = scmp.lt.s32.totalorder %s3098_s18, %s3092_s5 }
  0x68   : > { %4661 = vst [vmem:[#allocation26_spill] sm:$0xff] %v3394_v5  ;;  %v3405_v13 = vpack.c.bf16 %v1319_v1, %v1315_v58  ;;  %v3407_v14 = vsub.f32 %v203_v45, %v1315_v58  ;;  %v3409_v15 = vsub.f32 %v207_v50, %v1319_v1  ;;  %2682 = vmatpush1.bf16.msra.mxu1 %v3394_v5  ;;  %v270_v21 = vand.u32 4294901760, %v204_v60  ;;  %v214_v44 = vld [vmem:[#allocation5 + $0xf0] sm:$0xff]  ;;  %v221_v56 = vld [vmem:[#allocation5 + $0x128] sm:$0xff]  ;;  %v219_v57 = vld [vmem:[#allocation5 + $0x118] sm:$0xff] }
  0x69   : > { %4662 = vst [vmem:[#allocation27_spill] sm:$0xff] %v3398_v7  ;;  %2492 = vmatprep.subr.bf16.mxu0 %v3398_v7  ;;  %v1317_v22 = vand.u32 4294901760, %v202_v2  ;;  %v1321_v27 = vand.u32 4294901760, %v206_v3  ;;  %v272_v29 = vand.u32 4294901760, %v209_v4  ;;  %v276_v30 = vand.u32 4294901760, %v213_v9  ;;  %v220_v0 = vld [vmem:[#allocation5 + $0x120] sm:$0xff]  ;;  %p3101_p3 = por %p3100_p13, %p3099_p10 }
  0x6a   : > { %4663 = vst [vmem:[#allocation28_spill] sm:$0xff] %v3405_v13  ;;  %2684 = vmatprep.subr.bf16.mxu1 %v3405_v13  ;;  %v1323_v31 = vand.u32 4294901760, %v211_v10  ;;  %v1327_v32 = vand.u32 4294901760, %v215_v11  ;;  %v3414_v34 = vpack.c.bf16 %v270_v21, %v266_v20  ;;  %v3416_v35 = vsub.f32 %v200_v59, %v266_v20  ;;  %v229_v13 = vld [vmem:[#allocation5 + $0x168] sm:$0xff]  ;;  %v227_v48 = vld [vmem:[#allocation5 + $0x158] sm:$0xff]  ;;  %v226_v46 = vld [vmem:[#allocation5 + $0x150] sm:$0xff] }
  0x6b   : > { %v3418_v36 = vsub.f32 %v204_v60, %v270_v21  ;;  %v3420_v37 = vpack.c.bf16 %v1321_v27, %v1317_v22  ;;  %v3422_v45 = vsub.f32 %v202_v2, %v1317_v22  ;;  %v3424_v50 = vsub.f32 %v206_v3, %v1321_v27  ;;  %v223_v21 = vld [vmem:[#allocation5 + $0x138] sm:$0xff]  ;;  %v230_v16 = vld [vmem:[#allocation5 + $0x170] sm:$0xff]  ;;  %p3102_p7 = pnand %p3101_p3, %p3095_p8 }
  0x6c   : > { %4664 = vst [vmem:[#allocation29_spill] sm:$0xff] %v3414_v34  ;;  %v3426_v52 = vpack.c.bf16 %v276_v30, %v272_v29  ;;  %v3428_v54 = vsub.f32 %v209_v4, %v272_v29  ;;  %2494 = vmatpush1.bf16.msra.mxu0 %v3414_v34  ;;  %v3432_v58 = vsub.f32 %v213_v9, %v276_v30  ;;  %v274_v1 = vand.u32 4294901760, %v208_v33  ;;  %v216_v30 = vld [vmem:[#allocation5 + $0x100] sm:$0xff]  ;;  %v225_v34 = vld [vmem:[#allocation5 + $0x148] sm:$0xff] }
  0x6d   : > { %4665 = vst [vmem:[#allocation30_spill] sm:$0xff] %v3420_v37  ;;  %2686 = vmatpush1.bf16.msra.mxu1 %v3420_v37  ;;  %v3434_v59 = vpack.c.bf16 %v1327_v32, %v1323_v31  ;;  %v3436_v60 = vsub.f32 %v211_v10, %v1323_v31  ;;  %v3439_v2 = vsub.f32 %v215_v11, %v1327_v32  ;;  %v278_v3 = vand.u32 4294901760, %v212_v38  ;;  %v218_v10 = vld [vmem:[#allocation5 + $0x110] sm:$0xff] }
  0x6e   : > { %4666 = vst [vmem:[#allocation31_spill] sm:$0xff] %v3426_v52  ;;  %2496 = vmatprep.subr.bf16.mxu0 %v3426_v52  ;;  %v1325_v4 = vand.u32 4294901760, %v210_v43  ;;  %v1329_v20 = vand.u32 4294901760, %v214_v44  ;;  %v3442_v22 = vsub.f32 %v208_v33, %v274_v1  ;;  %v280_v27 = vand.u32 4294901760, %v217_v55  ;;  %v222_v52 = vld [vmem:[#allocation5 + $0x130] sm:$0xff] }
  0x6f   : > { %4667 = vst [vmem:[#allocation32_spill] sm:$0xff] %v3434_v59  ;;  %4668 = vst [vmem:[#allocation33_spill] sm:$0xff] %v3439_v2  ;;  %2688 = vmatprep.subr.bf16.mxu1 %v3434_v59  ;;  %v284_v9 = vand.u32 4294901760, %v221_v56  ;;  %v1331_v29 = vand.u32 4294901760, %v219_v57  ;;  %v3444_v31 = vpack.c.bf16 %v278_v3, %v274_v1  ;;  %v3446_v37 = vsub.f32 %v212_v38, %v278_v3 }
  0x70   : > { %v3448_v11 = vpack.c.bf16 %v1329_v20, %v1325_v4  ;;  %v3450_v32 = vsub.f32 %v210_v43, %v1325_v4  ;;  %v3452_v59 = vsub.f32 %v214_v44, %v1329_v20  ;;  %v3456_v7 = vsub.f32 %v217_v55, %v280_v27  ;;  %v231_v55 = vld [vmem:[#allocation5 + $0x178] sm:$0xff] }
  0x71   : > { %4669 = vst [vmem:[#allocation34_spill] sm:$0xff] %v3444_v31  ;;  %v3454_v33 = vpack.c.bf16 %v284_v9, %v280_v27  ;;  %v3458_v5 = vsub.f32 %v221_v56, %v284_v9  ;;  %2498 = vmatpush1.bf16.msra.mxu0 %v3444_v31  ;;  %v1335_v38 = vand.u32 4294901760, %v223_v21  ;;  %v3462_v1 = vsub.f32 %v219_v57, %v1331_v29  ;;  %v224_v57 = vld [vmem:[#allocation5 + $0x140] sm:$0xff] }
  0x72   : > { %4670 = vst [vmem:[#allocation35_spill] sm:$0xff] %v3448_v11  ;;  %4671 = vst [vmem:[#allocation36_spill] sm:$0xff] %v3450_v32  ;;  %2690 = vmatpush1.bf16.msra.mxu1 %v3448_v11  ;;  %v282_v43 = vand.u32 4294901760, %v216_v30  ;;  %v286_v3 = vand.u32 4294901760, %v220_v0  ;;  %v1333_v4 = vand.u32 4294901760, %v218_v10  ;;  %v1337_v44 = vand.u32 4294901760, %v222_v52 }
  0x73   : > { %4672 = vst [vmem:[#allocation37_spill] sm:$0xff] %v3452_v59  ;;  %4673 = vst [vmem:[#allocation38_spill] sm:$0xff] %v3454_v33  ;;  %2500 = vmatprep.subr.bf16.mxu0 %v3454_v33  ;;  %v288_v20 = vand.u32 4294901760, %v225_v34  ;;  %v292_v61 = vand.u32 4294901760, %v229_v13  ;;  %v3465_v27 = vpack.c.bf16 %v1335_v38, %v1331_v29  ;;  %v3467_v56 = vsub.f32 %v223_v21, %v1335_v38  ;;  %v228_v31 = vld [vmem:[#allocation5 + $0x160] sm:$0xff]  ;;  %v233_v29 = vld [vmem:[#allocation5 + $0x188] sm:$0xff] }
  0x74   : > { %4674 = vst [vmem:[#allocation39_spill] sm:$0xff] %v3456_v7  ;;  %4675 = vst [vmem:[#allocation40_spill] sm:$0xff] %v3458_v5  ;;  %v3469_v9 = vpack.c.bf16 %v286_v3, %v282_v43  ;;  %v3471_v11 = vsub.f32 %v216_v30, %v282_v43  ;;  %v3473_v39 = vsub.f32 %v220_v0, %v286_v3  ;;  %v1339_v0 = vand.u32 4294901760, %v227_v48 }
  0x75   : > { %4676 = vst [vmem:[#allocation41_spill] sm:$0xff] %v3462_v1  ;;  %4677 = vst [vmem:[#allocation42_spill] sm:$0xff] %v3465_v27  ;;  %v3475_v33 = vpack.c.bf16 %v1337_v44, %v1333_v4  ;;  %v3477_v25 = vsub.f32 %v218_v10, %v1333_v4  ;;  %v3479_v23 = vsub.f32 %v222_v52, %v1337_v44  ;;  %v237_v1 = vld [vmem:[#allocation5 + $0x1a8] sm:$0xff]  ;;  %2692 = vmatprep.subr.bf16.mxu1 %v3465_v27 }
  0x76   : > { %4678 = vst [vmem:[#allocation43_spill] sm:$0xff] %v3467_v56  ;;  %4679 = vst [vmem:[#allocation44_spill] sm:$0xff] %v3469_v9  ;;  %2502 = vmatpush1.bf16.msra.mxu0 %v3469_v9  ;;  %v3483_v21 = vpack.c.bf16 %v292_v61, %v288_v20  ;;  %v3485_v30 = vsub.f32 %v225_v34, %v288_v20  ;;  %v3487_v38 = vsub.f32 %v229_v13, %v292_v61  ;;  %v245_v56 = vld [vmem:[#allocation5 + $0x1e8] sm:$0xff] }
  0x77   : > { %4680 = vst [vmem:[#allocation45_spill] sm:$0xff] %v3471_v11  ;;  %4681 = vst [vmem:[#allocation46_spill] sm:$0xff] %v3473_v39  ;;  %2694 = vmatpush1.bf16.msra.mxu1 %v3475_v33  ;;  %v1343_v10 = vand.u32 4294901760, %v231_v55  ;;  %v290_v43 = vand.u32 4294901760, %v224_v57  ;;  %v294_v52 = vand.u32 4294901760, %v228_v31  ;;  %v1341_v3 = vand.u32 4294901760, %v226_v46 }
  0x78   : > { %4682 = vst [vmem:[#allocation47_spill] sm:$0xff] %v3475_v33  ;;  %4683 = vst [vmem:[#allocation48_spill] sm:$0xff] %v3477_v25  ;;  %2504 = vmatprep.subr.bf16.mxu0 %v3483_v21  ;;  %v3491_v4 = vsub.f32 %v227_v48, %v1339_v0  ;;  %v1345_v44 = vand.u32 4294901760, %v230_v16  ;;  %v296_v27 = vand.u32 4294901760, %v233_v29  ;;  %v300_v9 = vand.u32 4294901760, %v237_v1  ;;  %v239_v25 = vld [vmem:[#allocation5 + $0x1b8] sm:$0xff] }
  0x79   : > { %4684 = vst [vmem:[#allocation49_spill] sm:$0xff] %v3479_v23  ;;  %4685 = vst [vmem:[#allocation50_spill] sm:$0xff] %v3483_v21  ;;  %v235_v23 = vld [vmem:[#allocation5 + $0x198] sm:$0xff]  ;;  %v3493_v34 = vpack.c.bf16 %v1343_v10, %v1339_v0  ;;  %v3495_v61 = vsub.f32 %v231_v55, %v1343_v10  ;;  %v3497_v13 = vpack.c.bf16 %v294_v52, %v290_v43  ;;  %v232_v33 = vld [vmem:[#allocation5 + $0x180] sm:$0xff] }
  0x7a   : > { %4686 = vst [vmem:[#allocation51_spill] sm:$0xff] %v3485_v30  ;;  %4687 = vst [vmem:[#allocation52_spill] sm:$0xff] %v3487_v38  ;;  %v3499_v20 = vsub.f32 %v224_v57, %v290_v43  ;;  %v236_v38 = vld [vmem:[#allocation5 + $0x1a0] sm:$0xff]  ;;  %v234_v30 = vld [vmem:[#allocation5 + $0x190] sm:$0xff]  ;;  %v3501_v39 = vsub.f32 %v228_v31, %v294_v52  ;;  %v3503_v48 = vpack.c.bf16 %v1345_v44, %v1341_v3  ;;  %v1347_v31 = vand.u32 4294901760, %v235_v23 }
  0x7b   : > { %4688 = vst [vmem:[#allocation53_spill] sm:$0xff] %v3491_v4  ;;  %4689 = vst [vmem:[#allocation54_spill] sm:$0xff] %v3493_v34  ;;  %v3505_v21 = vsub.f32 %v226_v46, %v1341_v3  ;;  %v3507_v4 = vsub.f32 %v230_v16, %v1345_v44  ;;  %v238_v11 = vld [vmem:[#allocation5 + $0x1b0] sm:$0xff]  ;;  %v241_v0 = vld [vmem:[#allocation5 + $0x1c8] sm:$0xff]  ;;  %2696 = vmatprep.subr.bf16.mxu1 %v3493_v34  ;;  %2506 = vmatpush1.bf16.msra.mxu0 %v3497_v13  ;;  %v1351_v46 = vand.u32 4294901760, %v239_v25 }
  0x7c   : > { %4690 = vst [vmem:[#allocation55_spill] sm:$0xff] %v3495_v61  ;;  %4691 = vst [vmem:[#allocation56_spill] sm:$0xff] %v3497_v13  ;;  %v3511_v55 = vpack.c.bf16 %v300_v9, %v296_v27  ;;  %v3513_v57 = vsub.f32 %v233_v29, %v296_v27  ;;  %v3515_v10 = vsub.f32 %v237_v1, %v300_v9  ;;  %2698 = vmatpush1.bf16.msra.mxu1 %v3503_v48 }
  0x7d   : > { %4692 = vst [vmem:[#allocation57_spill] sm:$0xff] %v3499_v20  ;;  %4693 = vst [vmem:[#allocation58_spill] sm:$0xff] %v3501_v39  ;;  %v298_v43 = vand.u32 4294901760, %v232_v33  ;;  %v302_v16 = vand.u32 4294901760, %v236_v38  ;;  %v1349_v52 = vand.u32 4294901760, %v234_v30  ;;  %v3519_v3 = vsub.f32 %v235_v23, %v1347_v31  ;;  %v246_v20 = vld [vmem:[#allocation5 + $0x1f0] sm:$0xff] }
  0x7e   : > { %4694 = vst [vmem:[#allocation59_spill] sm:$0xff] %v3503_v48  ;;  %4695 = vst [vmem:[#allocation60_spill] sm:$0xff] %v3505_v21  ;;  %2508 = vmatprep.subr.bf16.mxu0 %v3511_v55  ;;  %v1353_v44 = vand.u32 4294901760, %v238_v11  ;;  %v304_v34 = vand.u32 4294901760, %v241_v0  ;;  %v308_v13 = vand.u32 4294901760, %v245_v56  ;;  %v247_v21 = vld [vmem:[#allocation5 + $0x1f8] sm:$0xff]  ;;  %v3521_v27 = vpack.c.bf16 %v1351_v46, %v1347_v31 }
  0x7f   : > { %4696 = vst [vmem:[#allocation61_spill] sm:$0xff] %v3507_v4  ;;  %4697 = vst [vmem:[#allocation62_spill] sm:$0xff] %v3511_v55  ;;  %v243_v4 = vld [vmem:[#allocation5 + $0x1d8] sm:$0xff]  ;;  %v3523_v1 = vsub.f32 %v239_v25, %v1351_v46  ;;  %v3525_v9 = vpack.c.bf16 %v302_v16, %v298_v43  ;;  %v3527_v29 = vsub.f32 %v232_v33, %v298_v43  ;;  %v240_v48 = vld [vmem:[#allocation5 + $0x1c0] sm:$0xff]  ;;  %v1359_v46 = vand.u32 4294901760, %v247_v21 }
  0x80   : > { %4698 = vst [vmem:[#allocation63_spill] sm:$0xff] %v3513_v57  ;;  %4699 = vst [vmem:[#allocation64_spill] sm:$0xff] %v3515_v10  ;;  %v244_v10 = vld [vmem:[#allocation5 + $0x1e0] sm:$0xff]  ;;  %v242_v57 = vld [vmem:[#allocation5 + $0x1d0] sm:$0xff]  ;;  %v3529_v39 = vsub.f32 %v236_v38, %v302_v16  ;;  %v3531_v23 = vpack.c.bf16 %v1353_v44, %v1349_v52  ;;  %v3533_v55 = vsub.f32 %v234_v30, %v1349_v52  ;;  %2700 = vmatprep.subr.bf16.mxu1 %v3521_v27 }
  0x81   : > { %4700 = vst [vmem:[#allocation65_spill] sm:$0xff] %v3519_v3  ;;  %4701 = vst [vmem:[#allocation66_spill] sm:$0xff] %v3521_v27  ;;  %v3535_v3 = vsub.f32 %v238_v11, %v1353_v44  ;;  %2510 = vmatpush1.bf16.msra.mxu0 %v3525_v9  ;;  %v3539_v25 = vpack.c.bf16 %v308_v13, %v304_v34  ;;  %v3541_v33 = vsub.f32 %v241_v0, %v304_v34 }
  0x82   : > { %4702 = vst [vmem:[#allocation67_spill] sm:$0xff] %v3525_v9  ;;  %4703 = vst [vmem:[#allocation68_spill] sm:$0xff] %v3527_v29  ;;  %v3543_v31 = vsub.f32 %v245_v56, %v308_v13  ;;  %v1355_v38 = vand.u32 4294901760, %v243_v4  ;;  %2702 = vmatpush1.bf16.msra.mxu1 %v3531_v23  ;;  %v306_v30 = vand.u32 4294901760, %v240_v48  ;;  %v310_v43 = vand.u32 4294901760, %v244_v10  ;;  %v179_v9 = vld [vmem:[%s3332_s3] sm:$0xff] }
  0x83   : > { %4704 = vst [vmem:[#allocation69_spill] sm:$0xff] %v3531_v23  ;;  %4705 = vst [vmem:[#allocation70_spill] sm:$0xff] %v3539_v25  ;;  %v1357_v11 = vand.u32 4294901760, %v242_v57  ;;  %2512 = vmatprep.subr.bf16.mxu0 %v3539_v25  ;;  %v1361_v52 = vand.u32 4294901760, %v246_v20  ;;  %v4485_v44 = vand.u32 4294901760, %v3346_v17  ;;  %v4484_v34 = vand.u32 4294901760, %v3348_v18 }
  0x84   : > { %4706 = vst [vmem:[#allocation71_spill] sm:$0xff] %v3543_v31  ;;  %v3547_v16 = vsub.f32 %v243_v4, %v1355_v38  ;;  %v3551_v0 = vpack.c.bf16 %v1359_v46, %v1355_v38  ;;  %v3553_v56 = vsub.f32 %v247_v21, %v1359_v46  ;;  %v3555_v13 = vpack.c.bf16 %v310_v43, %v306_v30 }
  0x85   : > { %v3557_v23 = vsub.f32 %v240_v48, %v306_v30  ;;  %v3560_v27 = vsub.f32 %v244_v10, %v310_v43  ;;  %v3562_v31 = vpack.c.bf16 %v1361_v52, %v1357_v11  ;;  %v3564_v4 = vsub.f32 %v242_v57, %v1357_v11 }
  0x86   : > { %4707 = vst [vmem:[#allocation72_spill] sm:$0xff] %v3547_v16  ;;  %4708 = vst [vmem:[#allocation73_spill] sm:$0xff] %v3551_v0  ;;  %v3566_v25 = vsub.f32 %v246_v20, %v1361_v52  ;;  %2704 = vmatprep.subr.bf16.mxu1 %v3551_v0  ;;  %2514 = vmatpush1.bf16.msra.mxu0 %v3555_v13  ;;  %v403_v21 = vsub.f32 %v3346_v17, %v4485_v44  ;;  %v4488_v10 = vand.u32 4294901760, %v3350_v19 }
  0x87   : > { %4709 = vst [vmem:[#allocation74_spill] sm:$0xff] %v3553_v56  ;;  %4710 = vst [vmem:[#allocation75_spill] sm:$0xff] %v3555_v13  ;;  %v415_v48 = vsub.f32 %v3348_v18, %v4484_v34  ;;  %v4493_v38 = vand.u32 4294901760, %v3354_v24  ;;  %2706 = vmatpush1.bf16.msra.mxu1 %v3562_v31  ;;  %v3579_v20 = vand.u32 4294901760, %v179_v9  ;;  %v4500_v57 = vand.u32 4294901760, %v3358_v26 }
  0x88   : > { %4711 = vst [vmem:[#allocation76_spill] sm:$0xff] %v3557_v23  ;;  %4712 = vst [vmem:[#allocation77_spill] sm:$0xff] %v3560_v27  ;;  %v4501_v46 = vand.u32 4294901760, %v3361_v28  ;;  %v4505_v30 = vand.u32 4294901760, %v3367_v40  ;;  %v404_v43 = vand.u32 4294901760, %v403_v21  ;;  %v1454_v52 = vsub.f32 %v3350_v19, %v4488_v10 }
  0x89   : > { %4713 = vst [vmem:[#allocation78_spill] sm:$0xff] %v3562_v31  ;;  %4714 = vst [vmem:[#allocation79_spill] sm:$0xff] %v3564_v4  ;;  %v416_v11 = vand.u32 4294901760, %v415_v48  ;;  %v1466_v34 = vsub.f32 %v3354_v24, %v4493_v38  ;;  %v3591_v44 = vsub.f32 %v179_v9, %v3579_v20  ;;  %v409_v31 = vsub.f32 %v3358_v26, %v4500_v57 }
  0x8a   : > { %4715 = vst [vmem:[#allocation80_spill] sm:$0xff] %v3566_v25  ;;  %4716 = vst [vmem:[#allocation81_spill] sm:$0xff] %v3579_v20  ;;  %v421_v21 = vsub.f32 %v3361_v28, %v4501_v46  ;;  %v1460_v48 = vsub.f32 %v3367_v40, %v4505_v30  ;;  %v1455_v13 = vand.u32 4294901760, %v1454_v52  ;;  %v4504_v38 = vand.u32 4294901760, %v3369_v41 }
  0x8b   : > { %4717 = vst [vmem:[#allocation82_spill] sm:$0xff] %v3591_v44  ;;  %v2515_v10 = vpack.c.bf16 %v416_v11, %v404_v43  ;;  %v1467_v0 = vand.u32 4294901760, %v1466_v34  ;;  %v3604_v9 = vand.u32 4294901760, %v3591_v44  ;;  %v410_v20 = vand.u32 4294901760, %v409_v31 }
  0x8c   : > { %v422_v24 = vand.u32 4294901760, %v421_v21  ;;  %v1461_v19 = vand.u32 4294901760, %v1460_v48  ;;  %v1472_v46 = vsub.f32 %v3369_v41, %v4504_v38  ;;  %v4507_v28 = vand.u32 4294901760, %v3371_v42 }
  0x8d   : > { %4718 = vst [vmem:[#allocation83_spill] sm:$0xff] %v3604_v9  ;;  %2516 = vmatprep.subr.bf16.mxu0 %v2515_v10  ;;  %v2707_v57 = vpack.c.bf16 %v1467_v0, %v1455_v13  ;;  %v4506_v43 = vand.u32 4294901760, %v3375_v47  ;;  %v348_v34 = vsub.f32 %v3591_v44, %v3604_v9  ;;  %v4508_v52 = vand.u32 4294901760, %v3379_v49 }
  0x8e   : > { %v2517_v11 = vpack.c.bf16 %v422_v24, %v410_v20  ;;  %v4511_v31 = vand.u32 4294901760, %v3382_v51  ;;  %v1473_v21 = vand.u32 4294901760, %v1472_v46  ;;  %v427_v0 = vsub.f32 %v3371_v42, %v4507_v28 }
  0x8f   : > { %2708 = vmatprep.subr.bf16.mxu1 %v2707_v57  ;;  %v439_v13 = vsub.f32 %v3375_v47, %v4506_v43  ;;  %v4512_v10 = vand.u32 4294901760, %v3384_v53  ;;  %v349_v48 = vand.u32 4294901760, %v348_v34  ;;  %v1478_v24 = vsub.f32 %v3379_v49, %v4508_v52 }
  0x90   : > { %v1490_v20 = vsub.f32 %v3382_v51, %v4511_v31  ;;  %v4517_v57 = vand.u32 4294901760, %v3390_v62  ;;  %v2709_v46 = vpack.c.bf16 %v1473_v21, %v1461_v19  ;;  %v428_v38 = vand.u32 4294901760, %v427_v0 }
  0x91   : > { %v440_v30 = vand.u32 4294901760, %v439_v13  ;;  %v433_v43 = vsub.f32 %v3384_v53, %v4512_v10  ;;  %350 = vmatmul.mubr.f32.vlgmr.msra.gmra.mrb[0].mxu0 %v349_v48  ;;  %1401 = vmatmul.mubr.f32.vlgmr.msra.gmra.mrb[0].mxu1 %v349_v48  ;;  %v1479_v34 = vand.u32 4294901760, %v1478_v24  ;;  %v4513_v9 = vand.u32 4294901760, %v3392_v63 }
  0x92   : > { %v1491_v28 = vand.u32 4294901760, %v1490_v20  ;;  %v445_v52 = vsub.f32 %v3390_v62, %v4517_v57  ;;  %2518 = vmatpush1.bf16.msra.mxu0 %v2517_v11  ;;  %2710 = vmatpush1.bf16.msra.mxu1 %v2709_v46  ;;  %v4514_v21 = vand.u32 4294901760, %v3396_v6  ;;  %v4515_v0 = vand.u32 4294901760, %v3400_v8 }
  0x93   : > { %v2519_v31 = vpack.c.bf16 %v440_v30, %v428_v38  ;;  %v434_v19 = vand.u32 4294901760, %v433_v43  ;;  %v1484_v48 = vsub.f32 %v3392_v63, %v4513_v9  ;;  %v4516_v24 = vand.u32 4294901760, %v3403_v12 }
  0x94   : > { %v2711_v13 = vpack.c.bf16 %v1491_v28, %v1479_v34  ;;  %v446_v10 = vand.u32 4294901760, %v445_v52  ;;  %v4719_v20 = vmov 0.0   ;;  %v1496_v38 = vsub.f32 %v3396_v6, %v4514_v21 }
  0x95   : > { %355 = vmatprep.mubr.f32.mxu0 %v4719_v20  ;;  %1406 = vmatprep.mubr.f32.mxu1 %v4719_v20  ;;  %v451_v28 = vsub.f32 %v3400_v8, %v4515_v0  ;;  %v4518_v30 = vand.u32 4294901760, %v3407_v14  ;;  %v4529_v43 = vand.u32 4294901760, %v3409_v15  ;;  %v1485_v52 = vand.u32 4294901760, %v1484_v48 }
  0x96   : > { %2520 = vmatprep.subr.bf16.mxu0 %v2519_v31  ;;  %2712 = vmatprep.subr.bf16.mxu1 %v2711_v13  ;;  %v2521_v11 = vpack.c.bf16 %v446_v10, %v434_v19  ;;  %v463_v46 = vsub.f32 %v3403_v12, %v4516_v24  ;;  %v4521_v31 = vand.u32 4294901760, %v3416_v35  ;;  %v1497_v34 = vand.u32 4294901760, %v1496_v38 }
  0x97   : > { %v452_v9 = vand.u32 4294901760, %v451_v28  ;;  %v1502_v21 = vsub.f32 %v3407_v14, %v4518_v30  ;;  %v1514_v0 = vsub.f32 %v3409_v15, %v4529_v43  ;;  %v4522_v19 = vand.u32 4294901760, %v3418_v36 }
  0x98   : > { %2522 = vmatpush1.bf16.msra.mxu0 %v2521_v11  ;;  %v464_v13 = vand.u32 4294901760, %v463_v46  ;;  %v457_v10 = vsub.f32 %v3416_v35, %v4521_v31  ;;  %v4527_v48 = vand.u32 4294901760, %v3422_v45  ;;  %v2713_v38 = vpack.c.bf16 %v1497_v34, %v1485_v52 }
  0x99   : > { %v1503_v28 = vand.u32 4294901760, %v1502_v21  ;;  %v1515_v24 = vand.u32 4294901760, %v1514_v0  ;;  %v4523_v57 = vand.u32 4294901760, %v3424_v50  ;;  %v469_v11 = vsub.f32 %v3418_v36, %v4522_v19 }
  0x9a   : > { %v2523_v30 = vpack.c.bf16 %v464_v13, %v452_v9  ;;  %v458_v44 = vand.u32 4294901760, %v457_v10  ;;  %v1508_v46 = vsub.f32 %v3422_v45, %v4527_v48  ;;  %2714 = vmatpush1.bf16.msra.mxu1 %v2713_v38  ;;  %v4524_v21 = vand.u32 4294901760, %v3428_v54 }
  0x9b   : > { %v2715_v31 = vpack.c.bf16 %v1515_v24, %v1503_v28  ;;  %v1520_v52 = vsub.f32 %v3424_v50, %v4523_v57  ;;  %v4525_v0 = vand.u32 4294901760, %v3432_v58  ;;  %v470_v9 = vand.u32 4294901760, %v469_v11 }
  0x9c   : > { %2524 = vmatprep.subr.bf16.mxu0 %v2523_v30  ;;  %v1509_v34 = vand.u32 4294901760, %v1508_v46  ;;  %v4526_v13 = vand.u32 4294901760, %v3436_v60  ;;  %v4528_v10 = vand.u32 4294901760, %v3439_v2  ;;  %v475_v24 = vsub.f32 %v3428_v54, %v4524_v21 }
  0x9d   : > { %2716 = vmatprep.subr.bf16.mxu1 %v2715_v31  ;;  %v1521_v19 = vand.u32 4294901760, %v1520_v52  ;;  %v487_v38 = vsub.f32 %v3432_v58, %v4525_v0  ;;  %v4534_v28 = vand.u32 4294901760, %v3442_v22  ;;  %v2525_v57 = vpack.c.bf16 %v470_v9, %v458_v44 }
  0x9e   : > { %v1526_v30 = vsub.f32 %v3436_v60, %v4526_v13  ;;  %v1538_v31 = vsub.f32 %v3439_v2, %v4528_v10  ;;  %v4533_v11 = vand.u32 4294901760, %v3446_v37  ;;  %v476_v52 = vand.u32 4294901760, %v475_v24  ;;  %v180_v24 = vld [vmem:[%s3332_s3 + $0x8] sm:$0xff] }
  0x9f   : > { %v2717_v46 = vpack.c.bf16 %v1521_v19, %v1509_v34  ;;  %v488_v21 = vand.u32 4294901760, %v487_v38  ;;  %v481_v0 = vsub.f32 %v3442_v22, %v4534_v28  ;;  %2526 = vmatpush1.bf16.msra.mxu0 %v2525_v57  ;;  %v4532_v48 = vand.u32 4294901760, %v3450_v32 }
  0xa0   : > { %v1527_v44 = vand.u32 4294901760, %v1526_v30  ;;  %v1539_v9 = vand.u32 4294901760, %v1538_v31  ;;  %v493_v13 = vsub.f32 %v3446_v37, %v4533_v11  ;;  %v4535_v19 = vand.u32 4294901760, %v3452_v59 }
  0xa1   : > { %2718 = vmatpush1.bf16.msra.mxu1 %v2717_v46  ;;  %v2527_v10 = vpack.c.bf16 %v488_v21, %v476_v52  ;;  %v482_v43 = vand.u32 4294901760, %v481_v0  ;;  %v4536_v34 = vand.u32 4294901760, %v3456_v7  ;;  %v1532_v57 = vsub.f32 %v3450_v32, %v4532_v48  ;;  %v4720_v0 = vld [vmem:[#allocation41_spill] sm:$0xff]  ;;  %v4721_v52 = vld [vmem:[#allocation43_spill] sm:$0xff] }
  0xa2   : > { %v2719_v38 = vpack.c.bf16 %v1539_v9, %v1527_v44  ;;  %v494_v2 = vand.u32 4294901760, %v493_v13  ;;  %v4537_v30 = vand.u32 4294901760, %v3458_v5  ;;  %v1544_v31 = vsub.f32 %v3452_v59, %v4535_v19  ;;  %v4726_v59 = vld [vmem:[#allocation48_spill] sm:$0xff] }
  0xa3   : > { %2528 = vmatprep.subr.bf16.mxu0 %v2527_v10  ;;  %v499_v21 = vsub.f32 %v3456_v7, %v4536_v34  ;;  %v4546_v46 = vand.u32 4294901760, %v4720_v0  ;;  %v4548_v44 = vand.u32 4294901760, %v4721_v52  ;;  %v1533_v9 = vand.u32 4294901760, %v1532_v57 }
  0xa4   : > { %2720 = vmatprep.subr.bf16.mxu1 %v2719_v38  ;;  %v2529_v13 = vpack.c.bf16 %v494_v2, %v482_v43  ;;  %v511_v48 = vsub.f32 %v3458_v5, %v4537_v30  ;;  %v3720_v10 = vand.u32 4294901760, %v180_v24  ;;  %v1545_v11 = vand.u32 4294901760, %v1544_v31  ;;  %v4724_v43 = vld [vmem:[#allocation45_spill] sm:$0xff]  ;;  %v4725_v30 = vld [vmem:[#allocation46_spill] sm:$0xff] }
  0xa5   : > { %v500_v28 = vand.u32 4294901760, %v499_v21  ;;  %v1550_v19 = vsub.f32 %v4720_v0, %v4546_v46  ;;  %v1562_v34 = vsub.f32 %v4721_v52, %v4548_v44  ;;  %v4549_v57 = vand.u32 4294901760, %v4724_v43  ;;  %v181_v52 = vld [vmem:[%s3332_s3 + $0x10] sm:$0xff] }
  0xa6   : > { %4722 = vst [vmem:[#allocation84_spill] sm:$0xff] %v3720_v10  ;;  %2530 = vmatpush1.bf16.msra.mxu0 %v2529_v13  ;;  %v512_v38 = vand.u32 4294901760, %v511_v48  ;;  %v3729_v2 = vsub.f32 %v180_v24, %v3720_v10  ;;  %v4555_v5 = vand.u32 4294901760, %v4725_v30  ;;  %v2721_v7 = vpack.c.bf16 %v1545_v11, %v1533_v9 }
  0xa7   : > { %v1551_v31 = vand.u32 4294901760, %v1550_v19  ;;  %v1563_v21 = vand.u32 4294901760, %v1562_v34  ;;  %v4554_v32 = vand.u32 4294901760, %v4726_v59  ;;  %v505_v48 = vsub.f32 %v4724_v43, %v4549_v57  ;;  %v4728_v19 = vld [vmem:[#allocation49_spill] sm:$0xff]  ;;  %v4730_v43 = vld [vmem:[#allocation52_spill] sm:$0xff] }
  0xa8   : > { %4723 = vst [vmem:[#allocation85_spill] sm:$0xff] %v3729_v2  ;;  %v2531_v46 = vpack.c.bf16 %v512_v38, %v500_v28  ;;  %v3735_v0 = vand.u32 4294901760, %v3729_v2  ;;  %v517_v24 = vsub.f32 %v4725_v30, %v4555_v5  ;;  %2722 = vmatpush1.bf16.msra.mxu1 %v2721_v7  ;;  %v4557_v34 = vand.u32 4294901760, %v4728_v19  ;;  %v4729_v28 = vld [vmem:[#allocation51_spill] sm:$0xff] }
  0xa9   : > { %v2723_v13 = vpack.c.bf16 %v1563_v21, %v1551_v31  ;;  %v1556_v11 = vsub.f32 %v4726_v59, %v4554_v32  ;;  %v4560_v9 = vand.u32 4294901760, %v4729_v28  ;;  %v506_v44 = vand.u32 4294901760, %v505_v48  ;;  %v4731_v32 = vld [vmem:[#allocation53_spill] sm:$0xff] }
  0xaa   : > { %4727 = vst [vmem:[#allocation46_spill] sm:$0xff] %v3735_v0  ;;  %2532 = vmatprep.subr.bf16.mxu0 %v2531_v46  ;;  %v359_v38 = vsub.f32 %v3729_v2, %v3735_v0  ;;  %v518_v57 = vand.u32 4294901760, %v517_v24  ;;  %v4561_v10 = vand.u32 4294901760, %v4730_v43  ;;  %v1568_v31 = vsub.f32 %v4728_v19, %v4557_v34  ;;  %v182_v19 = vld [vmem:[%s3332_s3 + $0x18] sm:$0xff] }
  0xab   : > { %2724 = vmatprep.subr.bf16.mxu1 %v2723_v13  ;;  %v1557_v7 = vand.u32 4294901760, %v1556_v11  ;;  %v523_v21 = vsub.f32 %v4729_v28, %v4560_v9  ;;  %v4564_v46 = vand.u32 4294901760, %v4731_v32  ;;  %v4567_v24 = vand.u32 4294901760, %v3495_v61 }
  0xac   : > { %v360_v5 = vand.u32 4294901760, %v359_v38  ;;  %v2533_v59 = vpack.c.bf16 %v518_v57, %v506_v44  ;;  %v535_v48 = vsub.f32 %v4730_v43, %v4561_v10  ;;  %v1569_v13 = vand.u32 4294901760, %v1568_v31  ;;  %v4733_v57 = vld [vmem:[#allocation57_spill] sm:$0xff]  ;;  %v4734_v10 = vld [vmem:[#allocation58_spill] sm:$0xff] }
  0xad   : > { %v524_v11 = vand.u32 4294901760, %v523_v21  ;;  %v1574_v34 = vsub.f32 %v4731_v32, %v4564_v46  ;;  %v3766_v0 = vand.u32 4294901760, %v181_v52  ;;  %v1586_v44 = vsub.f32 %v3495_v61, %v4567_v24  ;;  %v4736_v32 = vld [vmem:[#allocation60_spill] sm:$0xff] }
  0xae   : > { %361 = vmatmul.mubr.f32.gmra.mrb[2].mxu0 %v360_v5  ;;  %1412 = vmatmul.mubr.f32.gmra.mrb[2].mxu1 %v360_v5  ;;  %v536_v9 = vand.u32 4294901760, %v535_v48  ;;  %v4570_v38 = vand.u32 4294901760, %v4733_v57  ;;  %v4574_v2 = vand.u32 4294901760, %v4734_v10  ;;  %v2725_v31 = vpack.c.bf16 %v1569_v13, %v1557_v7  ;;  %v4739_v13 = vld [vmem:[#allocation63_spill] sm:$0xff] }
  0xaf   : > { %4732 = vst [vmem:[#allocation86_spill] sm:$0xff] %v3766_v0  ;;  %2534 = vmatpush1.bf16.msra.mxu0 %v2533_v59  ;;  %366 = vmatprep.mubr.f32.mxu0 %v4719_v20  ;;  %v1575_v21 = vand.u32 4294901760, %v1574_v34  ;;  %v3775_v46 = vsub.f32 %v181_v52, %v3766_v0  ;;  %v4576_v43 = vand.u32 4294901760, %v4736_v32  ;;  %v1587_v48 = vand.u32 4294901760, %v1586_v44 }
  0xb0   : > { %v2535_v5 = vpack.c.bf16 %v536_v9, %v524_v11  ;;  %1417 = vmatprep.mubr.f32.mxu1 %v4719_v20  ;;  %v529_v24 = vsub.f32 %v4733_v57, %v4570_v38  ;;  %v541_v59 = vsub.f32 %v4734_v10, %v4574_v2  ;;  %2726 = vmatpush1.bf16.msra.mxu1 %v2725_v31  ;;  %v4738_v9 = vld [vmem:[#allocation61_spill] sm:$0xff]  ;;  %v4587_v11 = vand.u32 4294901760, %v4739_v13  ;;  %v4740_v57 = vld [vmem:[#allocation64_spill] sm:$0xff] }
  0xb1   : > { %4735 = vst [vmem:[#allocation87_spill] sm:$0xff] %v3775_v46  ;;  %v3786_v34 = vand.u32 4294901760, %v3775_v46  ;;  %v1580_v52 = vsub.f32 %v4736_v32, %v4576_v43  ;;  %v4582_v7 = vand.u32 4294901760, %v4738_v9  ;;  %v2727_v44 = vpack.c.bf16 %v1587_v48, %v1575_v21  ;;  %v4741_v21 = vld [vmem:[#allocation65_spill] sm:$0xff] }
  0xb2   : > { %2536 = vmatprep.subr.bf16.mxu0 %v2535_v5  ;;  %v530_v61 = vand.u32 4294901760, %v529_v24  ;;  %v542_v38 = vand.u32 4294901760, %v541_v59  ;;  %v4583_v28 = vand.u32 4294901760, %v4740_v57  ;;  %v547_v43 = vsub.f32 %v4739_v13, %v4587_v11 }
  0xb3   : > { %4737 = vst [vmem:[#allocation88_spill] sm:$0xff] %v3786_v34  ;;  %v370_v31 = vsub.f32 %v3775_v46, %v3786_v34  ;;  %v1581_v2 = vand.u32 4294901760, %v1580_v52  ;;  %v1592_v10 = vsub.f32 %v4738_v9, %v4582_v7  ;;  %2728 = vmatprep.subr.bf16.mxu1 %v2727_v44  ;;  %v4586_v48 = vand.u32 4294901760, %v4741_v21 }
  0xb4   : > { %v2537_v5 = vpack.c.bf16 %v542_v38, %v530_v61  ;;  %v559_v24 = vsub.f32 %v4740_v57, %v4583_v28  ;;  %v4584_v59 = vand.u32 4294901760, %v3523_v1  ;;  %v548_v46 = vand.u32 4294901760, %v547_v43 }
  0xb5   : > { %v371_v34 = vand.u32 4294901760, %v370_v31  ;;  %v1593_v52 = vand.u32 4294901760, %v1592_v10  ;;  %v3808_v32 = vand.u32 4294901760, %v182_v19  ;;  %v1598_v44 = vsub.f32 %v4741_v21, %v4586_v48  ;;  %v183_v48 = vld [vmem:[%s3332_s3 + $0x20] sm:$0xff] }
  0xb6   : > { %2538 = vmatpush1.bf16.msra.mxu0 %v2537_v5  ;;  %v560_v7 = vand.u32 4294901760, %v559_v24  ;;  %v1610_v61 = vsub.f32 %v3523_v1, %v4584_v59  ;;  %v4585_v38 = vand.u32 4294901760, %v3527_v29  ;;  %v4592_v43 = vand.u32 4294901760, %v3529_v39 }
  0xb7   : > { %4742 = vst [vmem:[#allocation61_spill] sm:$0xff] %v3808_v32  ;;  %372 = vmatmul.mubr.f32.gmra.mrb[4].mxu0 %v371_v34  ;;  %1423 = vmatmul.mubr.f32.gmra.mrb[4].mxu1 %v371_v34  ;;  %v2729_v28 = vpack.c.bf16 %v1593_v52, %v1581_v2  ;;  %v3818_v10 = vsub.f32 %v182_v19, %v3808_v32  ;;  %v4593_v31 = vand.u32 4294901760, %v3533_v55  ;;  %v1599_v24 = vand.u32 4294901760, %v1598_v44 }
  0xb8   : > { %377 = vmatprep.mubr.f32.mxu0 %v4719_v20  ;;  %v2539_v5 = vpack.c.bf16 %v560_v7, %v548_v46  ;;  %1428 = vmatprep.mubr.f32.mxu1 %v4719_v20  ;;  %v1611_v59 = vand.u32 4294901760, %v1610_v61  ;;  %v553_v34 = vsub.f32 %v3527_v29, %v4585_v38  ;;  %v565_v19 = vsub.f32 %v3529_v39, %v4592_v43  ;;  %v4745_v38 = vld [vmem:[#allocation71_spill] sm:$0xff] }
  0xb9   : > { %4743 = vst [vmem:[#allocation63_spill] sm:$0xff] %v3818_v10  ;;  %2730 = vmatpush1.bf16.msra.mxu1 %v2729_v28  ;;  %v3828_v2 = vand.u32 4294901760, %v3818_v10  ;;  %v1604_v46 = vsub.f32 %v3533_v55, %v4593_v31  ;;  %v4598_v7 = vand.u32 4294901760, %v3535_v3  ;;  %v4599_v61 = vand.u32 4294901760, %v3541_v33 }
  0xba   : > { %2540 = vmatprep.subr.bf16.mxu0 %v2539_v5  ;;  %v2731_v52 = vpack.c.bf16 %v1611_v59, %v1599_v24  ;;  %v554_v44 = vand.u32 4294901760, %v553_v34  ;;  %v4600_v28 = vand.u32 4294901760, %v4745_v38  ;;  %v566_v29 = vand.u32 4294901760, %v565_v19 }
  0xbb   : > { %4744 = vst [vmem:[#allocation64_spill] sm:$0xff] %v3828_v2  ;;  %v381_v11 = vsub.f32 %v3818_v10, %v3828_v2  ;;  %v1605_v32 = vand.u32 4294901760, %v1604_v46  ;;  %v1616_v43 = vsub.f32 %v3535_v3, %v4598_v7  ;;  %v571_v59 = vsub.f32 %v3541_v33, %v4599_v61 }
  0xbc   : > { %2732 = vmatprep.subr.bf16.mxu1 %v2731_v52  ;;  %v583_v5 = vsub.f32 %v4745_v38, %v4600_v28  ;;  %v4604_v24 = vand.u32 4294901760, %v3547_v16  ;;  %v4603_v34 = vand.u32 4294901760, %v3553_v56  ;;  %v2541_v19 = vpack.c.bf16 %v566_v29, %v554_v44 }
  0xbd   : > { %v382_v31 = vand.u32 4294901760, %v381_v11  ;;  %v1617_v46 = vand.u32 4294901760, %v1616_v43  ;;  %v3853_v2 = vand.u32 4294901760, %v183_v48  ;;  %v572_v10 = vand.u32 4294901760, %v571_v59 }
  0xbe   : > { %v584_v7 = vand.u32 4294901760, %v583_v5  ;;  %v1622_v52 = vsub.f32 %v3547_v16, %v4604_v24  ;;  %v1634_v61 = vsub.f32 %v3553_v56, %v4603_v34  ;;  %v4602_v29 = vand.u32 4294901760, %v3557_v23  ;;  %2542 = vmatpush1.bf16.msra.mxu0 %v2541_v19  ;;  %v4749_v19 = vld [vmem:[#allocation14_spill] sm:$0xff] }
  0xbf   : > { %4746 = vst [vmem:[#allocation65_spill] sm:$0xff] %v3853_v2  ;;  %383 = vmatmul.mubr.f32.gmra.mrb[6].mxu0 %v382_v31  ;;  %1434 = vmatmul.mubr.f32.gmra.mrb[6].mxu1 %v382_v31  ;;  %v2733_v28 = vpack.c.bf16 %v1617_v46, %v1605_v32  ;;  %v3862_v38 = vsub.f32 %v183_v48, %v3853_v2  ;;  %v4606_v11 = vand.u32 4294901760, %v3560_v27  ;;  %v4605_v5 = vand.u32 4294901760, %v3564_v4  ;;  %v4750_v46 = vld [vmem:[#allocation16_spill] sm:$0xff] }
  0xc0   : > { %388 = vmatprep.mubr.f32.mxu0 %v4719_v20  ;;  %v2543_v43 = vpack.c.bf16 %v584_v7, %v572_v10  ;;  %v1623_v44 = vand.u32 4294901760, %v1622_v52  ;;  %v1635_v59 = vand.u32 4294901760, %v1634_v61  ;;  %1439 = vmatprep.mubr.f32.mxu1 %v4719_v20  ;;  %v577_v48 = vsub.f32 %v3557_v23, %v4602_v29 }
  0xc1   : > { %4747 = vst [vmem:[#allocation89_spill] sm:$0xff] %v3862_v38  ;;  %2734 = vmatpush1.bf16.msra.mxu1 %v2733_v28  ;;  %v3870_v32 = vand.u32 4294901760, %v3862_v38  ;;  %v589_v31 = vsub.f32 %v3560_v27, %v4606_v11  ;;  %v4611_v10 = vand.u32 4294901760, %v3566_v25  ;;  %v1628_v61 = vsub.f32 %v3564_v4, %v4605_v5 }
  0xc2   : > { %2544 = vmatprep.subr.bf16.mxu0 %v2543_v43  ;;  %v2735_v7 = vpack.c.bf16 %v1635_v59, %v1623_v44  ;;  %v2547_v28 = vpack.c.bf16 %v3348_v18, %v3346_v17  ;;  %v2739_v52 = vpack.c.bf16 %v4750_v46, %v4749_v19  ;;  %v578_v34 = vand.u32 4294901760, %v577_v48  ;;  %v4751_v59 = vld [vmem:[#allocation19_spill] sm:$0xff] }
  0xc3   : > { %4748 = vst [vmem:[#allocation90_spill] sm:$0xff] %v3870_v32  ;;  %v392_v29 = vsub.f32 %v3862_v38, %v3870_v32  ;;  %v590_v24 = vand.u32 4294901760, %v589_v31  ;;  %v1640_v43 = vsub.f32 %v3566_v25, %v4611_v10  ;;  %v1629_v44 = vand.u32 4294901760, %v1628_v61 }
  0xc4   : > { %2736 = vmatprep.subr.bf16.mxu1 %v2735_v7  ;;  %v2549_v5 = vpack.c.bf16 %v4751_v59, %v3358_v26  ;;  %v2741_v11 = vpack.c.bf16 %v3369_v41, %v3367_v40  ;;  %v2551_v48 = vpack.c.bf16 %v3375_v47, %v3371_v42  ;;  %v2743_v31 = vpack.c.bf16 %v3382_v51, %v3379_v49  ;;  %v4759_v41 = vld [vmem:[#allocation43_spill] sm:$0xff]  ;;  %v4760_v59 = vld [vmem:[#allocation84_spill] sm:$0xff]  ;;  %v4761_v26 = vld [vmem:[#allocation45_spill] sm:$0xff] }
  0xc5   : > { %v393_v18 = vand.u32 4294901760, %v392_v29  ;;  %v2545_v17 = vpack.c.bf16 %v590_v24, %v578_v34  ;;  %v1641_v46 = vand.u32 4294901760, %v1640_v43  ;;  %v4752_v29 = vld [vmem:[#allocation81_spill] sm:$0xff]  ;;  %v2555_v24 = vpack.c.bf16 %v3403_v12, %v3400_v8 }
  0xc6   : > { %v2747_v34 = vpack.c.bf16 %v3409_v15, %v3407_v14  ;;  %v2749_v7 = vpack.c.bf16 %v3424_v50, %v3422_v45  ;;  %v2559_v61 = vpack.c.bf16 %v3432_v58, %v3428_v54  ;;  %v4755_v43 = vld [vmem:[#allocation37_spill] sm:$0xff]  ;;  %v4762_v19 = vand.u32 4294901760, %v3371_v42 }
  0xc7   : > { %394 = vmatmul.mubr.f32.gmra.mrb[8].mxu0 %v393_v18  ;;  %1445 = vmatmul.mubr.f32.gmra.mrb[8].mxu1 %v393_v18  ;;  %v2737_v32 = vpack.c.bf16 %v1641_v46, %v1629_v44  ;;  %v2553_v18 = vpack.c.bf16 %v3390_v62, %v3384_v53  ;;  %v2561_v46 = vpack.c.bf16 %v3446_v37, %v3442_v22  ;;  %v4763_v38 = vand.u32 4294901760, %v3375_v47 }
  0xc8   : > { %2546 = vmatpush1.bf16.msra.mxu0 %v2545_v17  ;;  %624 = vmatprep.mubr.f32.mxu0 %v4719_v20  ;;  %v2745_v17 = vpack.c.bf16 %v3396_v6, %v3392_v63  ;;  %v4764_v25 = vand.u32 4294901760, %v3379_v49  ;;  %v4765_v4 = vand.u32 4294901760, %v3382_v51  ;;  %v4766_v23 = vand.u32 4294901760, %v3384_v53 }
  0xc9   : > { %2738 = vmatpush1.bf16.msra.mxu1 %v2737_v32  ;;  %2548 = vmatprep.subr.bf16.mxu0 %v2547_v28  ;;  %v2557_v32 = vpack.c.bf16 %v3418_v36, %v3416_v35  ;;  %v3936_v2 = vpack.c.bf16 %v4763_v38, %v4762_v19  ;;  %v4767_v56 = vand.u32 4294901760, %v3390_v62  ;;  %v4768_v42 = vand.u32 4294901760, %v3392_v63 }
  0xca   : > { %1675 = vmatprep.mubr.f32.mxu1 %v4719_v20  ;;  %2740 = vmatprep.subr.bf16.mxu1 %v2739_v52  ;;  %v4754_v52 = vld [vmem:[#allocation36_spill] sm:$0xff]  ;;  %v3943_v27 = vpack.c.bf16 %v4765_v4, %v4764_v25  ;;  %v4769_v47 = vand.u32 4294901760, %v3396_v6  ;;  %v4770_v49 = vand.u32 4294901760, %v3400_v8  ;;  %v4771_v51 = vand.u32 4294901760, %v3403_v12 }
  0xcb   : > { %626 = vmatmul.mubr.f32.vlgmr.msra.gmra.mrb[0].mxu0 %v4752_v29  ;;  %v2753_v44 = vpack.c.bf16 %v4755_v43, %v4754_v52  ;;  %v3949_v16 = vpack.c.bf16 %v4767_v56, %v4766_v23  ;;  %v4772_v53 = vand.u32 4294901760, %v3407_v14  ;;  %v4773_v62 = vand.u32 4294901760, %v3409_v15 }
  0xcc   : > { %2550 = vmatpush1.bf16.msra.mxu0 %v2549_v5  ;;  %1677 = vmatmul.mubr.f32.vlgmr.msra.gmra.mrb[0].mxu1 %v4752_v29  ;;  %v4753_v5 = vld [vmem:[#allocation33_spill] sm:$0xff]  ;;  %v3955_v38 = vpack.c.bf16 %v4769_v47, %v4768_v42  ;;  %v3961_v25 = vpack.c.bf16 %v4771_v51, %v4770_v49  ;;  %v4774_v63 = vand.u32 4294901760, %v3416_v35  ;;  %v4775_v6 = vand.u32 4294901760, %v3418_v36 }
  0xcd   : > { %2742 = vmatpush1.bf16.msra.mxu1 %v2741_v11  ;;  %2552 = vmatprep.subr.bf16.mxu0 %v2551_v48  ;;  %v2751_v28 = vpack.c.bf16 %v4753_v5, %v3436_v60  ;;  %v4756_v11 = vld [vmem:[#allocation39_spill] sm:$0xff]  ;;  %v4757_v48 = vld [vmem:[#allocation40_spill] sm:$0xff]  ;;  %v4758_v29 = vld [vmem:[#allocation41_spill] sm:$0xff]  ;;  %v3967_v23 = vpack.c.bf16 %v4773_v62, %v4772_v53  ;;  %v4776_v8 = vand.u32 4294901760, %v3422_v45  ;;  %v4777_v12 = vand.u32 4294901760, %v3424_v50 }
  0xce   : > { %2744 = vmatprep.subr.bf16.mxu1 %v2743_v31  ;;  %631 = vmatprep.mubr.f32.mxu0 %v4719_v20  ;;  %v2563_v10 = vpack.c.bf16 %v4757_v48, %v4756_v11  ;;  %v2755_v40 = vpack.c.bf16 %v4759_v41, %v4758_v29  ;;  %v2565_v31 = vpack.c.bf16 %v4725_v30, %v4761_v26  ;;  %v4778_v14 = vand.u32 4294901760, %v3428_v54  ;;  %v4798_v62 = vld [vmem:[#allocation52_spill] sm:$0xff] }
  0xcf   : > { %1682 = vmatprep.mubr.f32.mxu1 %v4719_v20  ;;  %633 = vmatmul.mubr.f32.gmra.mrb[2].mxu0 %v4760_v59  ;;  %v3973_v56 = vpack.c.bf16 %v4775_v6, %v4774_v63  ;;  %v3980_v4 = vpack.c.bf16 %v4777_v12, %v4776_v8  ;;  %v4779_v15 = vand.u32 4294901760, %v3432_v58  ;;  %v4780_v35 = vand.u32 4294901760, %v3436_v60  ;;  %v4800_v6 = vld [vmem:[#allocation53_spill] sm:$0xff]  ;;  %v4802_v8 = vld [vmem:[#allocation55_spill] sm:$0xff] }
  0xd0   : > { %2554 = vmatpush1.bf16.msra.mxu0 %v2553_v18  ;;  %1684 = vmatmul.mubr.f32.gmra.mrb[2].mxu1 %v4760_v59  ;;  %v4781_v36 = vand.u32 4294901760, %v4753_v5  ;;  %v4782_v45 = vand.u32 4294901760, %v3442_v22  ;;  %v4783_v50 = vand.u32 4294901760, %v3446_v37  ;;  %v4784_v54 = vand.u32 4294901760, %v4754_v52  ;;  %v4833_v59 = vld [vmem:[#allocation77_spill] sm:$0xff] }
  0xd1   : > { %2746 = vmatpush1.bf16.msra.mxu1 %v2745_v17  ;;  %2556 = vmatprep.subr.bf16.mxu0 %v2555_v24  ;;  %v3986_v19 = vpack.c.bf16 %v4779_v15, %v4778_v14  ;;  %v4785_v58 = vand.u32 4294901760, %v4755_v43  ;;  %v4786_v60 = vand.u32 4294901760, %v4756_v11  ;;  %v4788_v22 = vand.u32 4294901760, %v4758_v29  ;;  %v4792_v11 = vld [vmem:[#allocation48_spill] sm:$0xff]  ;;  %v4804_v14 = vld [vmem:[#allocation57_spill] sm:$0xff] }
  0xd2   : > { %2748 = vmatprep.subr.bf16.mxu1 %v2747_v34  ;;  %638 = vmatprep.mubr.f32.mxu0 %v4719_v20  ;;  %v3992_v18 = vpack.c.bf16 %v4781_v36, %v4780_v35  ;;  %v4000_v17 = vpack.c.bf16 %v4783_v50, %v4782_v45  ;;  %v4787_v34 = vand.u32 4294901760, %v4757_v48  ;;  %v4789_v37 = vand.u32 4294901760, %v4759_v41  ;;  %v4794_v48 = vld [vmem:[#allocation49_spill] sm:$0xff]  ;;  %v4806_v35 = vld [vmem:[#allocation58_spill] sm:$0xff] }
  0xd3   : > { %1689 = vmatprep.mubr.f32.mxu1 %v4719_v20  ;;  %640 = vmatmul.mubr.f32.gmra.mrb[4].mxu0 %v3766_v0  ;;  %v4006_v24 = vpack.c.bf16 %v4785_v58, %v4784_v54  ;;  %v4790_v52 = vand.u32 4294901760, %v4761_v26  ;;  %v4791_v43 = vand.u32 4294901760, %v4725_v30  ;;  %v4793_v49 = vand.u32 4294901760, %v4792_v11 }
  0xd4   : > { %v4012_v5 = vpack.c.bf16 %v4787_v34, %v4786_v60  ;;  %2558 = vmatpush1.bf16.msra.mxu0 %v2557_v32  ;;  %1691 = vmatmul.mubr.f32.gmra.mrb[4].mxu1 %v3766_v0  ;;  %v4019_v42 = vpack.c.bf16 %v4789_v37, %v4788_v22  ;;  %v4795_v51 = vand.u32 4294901760, %v4794_v48  ;;  %v4796_v32 = vld [vmem:[#allocation51_spill] sm:$0xff]  ;;  %v4799_v41 = vand.u32 4294901760, %v4798_v62 }
  0xd5   : > { %v4025_v47 = vpack.c.bf16 %v4791_v43, %v4790_v52  ;;  %2750 = vmatpush1.bf16.msra.mxu1 %v2749_v7  ;;  %2560 = vmatprep.subr.bf16.mxu0 %v2559_v61  ;;  %v4797_v29 = vand.u32 4294901760, %v4796_v32  ;;  %v4801_v26 = vand.u32 4294901760, %v4800_v6  ;;  %v4803_v30 = vand.u32 4294901760, %v4802_v8  ;;  %v4808_v7 = vld [vmem:[#allocation60_spill] sm:$0xff] }
  0xd6   : > { %v4031_v53 = vpack.c.bf16 %v4795_v51, %v4793_v49  ;;  %v4805_v15 = vand.u32 4294901760, %v4804_v14  ;;  %v4807_v36 = vand.u32 4294901760, %v4806_v35  ;;  %2752 = vmatprep.subr.bf16.mxu1 %v2751_v28  ;;  %645 = vmatprep.mubr.f32.mxu0 %v4719_v20  ;;  %v4809_v61 = vand.u32 4294901760, %v4808_v7  ;;  %v4816_v28 = vld [vmem:[#allocation61_spill] sm:$0xff]  ;;  %v4817_v43 = vld [vmem:[#allocation68_spill] sm:$0xff] }
  0xd7   : > { %v4037_v63 = vpack.c.bf16 %v4799_v41, %v4797_v29  ;;  %v4043_v12 = vpack.c.bf16 %v4803_v30, %v4801_v26  ;;  %v4810_v50 = vand.u32 4294901760, %v4738_v9  ;;  %v4811_v58 = vand.u32 4294901760, %v4739_v13  ;;  %1696 = vmatprep.mubr.f32.mxu1 %v4719_v20  ;;  %647 = vmatmul.mubr.f32.gmra.mrb[6].mxu0 %v4816_v28 }
  0xd8   : > { %v4049_v45 = vpack.c.bf16 %v4807_v36, %v4805_v15  ;;  %v4812_v60 = vand.u32 4294901760, %v4740_v57  ;;  %v4813_v22 = vand.u32 4294901760, %v4741_v21  ;;  %v4814_v37 = vand.u32 4294901760, %v3523_v1  ;;  %v4825_v36 = vld [vmem:[#allocation71_spill] sm:$0xff]  ;;  %2562 = vmatpush1.bf16.msra.mxu0 %v2561_v46  ;;  %1698 = vmatmul.mubr.f32.gmra.mrb[6].mxu1 %v4816_v28 }
  0xd9   : > { %v4056_v54 = vpack.c.bf16 %v4810_v50, %v4809_v61  ;;  %v4818_v49 = vand.u32 4294901760, %v4817_v43  ;;  %v4819_v51 = vand.u32 4294901760, %v3529_v39  ;;  %v4821_v41 = vand.u32 4294901760, %v3533_v55  ;;  %2754 = vmatpush1.bf16.msra.mxu1 %v2753_v44  ;;  %2564 = vmatprep.subr.bf16.mxu0 %v2563_v10 }
  0xda   : > { %v4062_v34 = vpack.c.bf16 %v4812_v60, %v4811_v58  ;;  %v4068_v52 = vpack.c.bf16 %v4814_v37, %v4813_v22  ;;  %v4822_v26 = vand.u32 4294901760, %v3535_v3  ;;  %v4824_v15 = vand.u32 4294901760, %v3541_v33  ;;  %v4827_v58 = vld [vmem:[#allocation72_spill] sm:$0xff]  ;;  %v4829_v22 = vld [vmem:[#allocation74_spill] sm:$0xff]  ;;  %2756 = vmatprep.subr.bf16.mxu1 %v2755_v40  ;;  %652 = vmatprep.mubr.f32.mxu0 %v4719_v20 }
  0xdb   : > { %v4076_v29 = vpack.c.bf16 %v4819_v51, %v4818_v49  ;;  %v4826_v61 = vand.u32 4294901760, %v4825_v36  ;;  %v4828_v60 = vand.u32 4294901760, %v4827_v58  ;;  %v4830_v37 = vand.u32 4294901760, %v4829_v22  ;;  %v4831_v51 = vld [vmem:[#allocation76_spill] sm:$0xff]  ;;  %1703 = vmatprep.mubr.f32.mxu1 %v4719_v20 }
  0xdc   : > { %4815 = vst [vmem:[#allocation33_spill] sm:$0xff] %v4068_v52  ;;  %v4082_v30 = vpack.c.bf16 %v4822_v26, %v4821_v41  ;;  %v4832_v0 = vand.u32 4294901760, %v4831_v51  ;;  %v4834_v41 = vand.u32 4294901760, %v4833_v59  ;;  %v4837_v52 = vld [vmem:[#allocation80_spill] sm:$0xff]  ;;  %v2757_v46 = vpack.c.bf16 %v4794_v48, %v4792_v11  ;;  %2566 = vmatpush1.bf16.msra.mxu0 %v2565_v31 }
  0xdd   : > { %4820 = vst [vmem:[#allocation36_spill] sm:$0xff] %v4076_v29  ;;  %v4088_v50 = vpack.c.bf16 %v4826_v61, %v4824_v15  ;;  %v4095_v49 = vpack.c.bf16 %v4830_v37, %v4828_v60  ;;  %v4838_v15 = vand.u32 4294901760, %v4837_v52  ;;  %v2567_v60 = vpack.c.bf16 %v4798_v62, %v4796_v32  ;;  %v4844_v48 = vld [vmem:[#allocation20_spill] sm:$0xff]  ;;  %v4847_v62 = vld [vmem:[#allocation85_spill] sm:$0xff] }
  0xde   : > { %4823 = vst [vmem:[#allocation37_spill] sm:$0xff] %v4082_v30  ;;  %v4101_v26 = vpack.c.bf16 %v4834_v41, %v4832_v0  ;;  %v4835_v30 = vld [vmem:[#allocation79_spill] sm:$0xff]  ;;  %v2759_v37 = vpack.c.bf16 %v4802_v8, %v4800_v6  ;;  %v4839_v0 = vld [vmem:[#allocation65_spill] sm:$0xff]  ;;  %v2569_v10 = vpack.c.bf16 %v4806_v35, %v4804_v14  ;;  %2758 = vmatpush1.bf16.msra.mxu1 %v2757_v46  ;;  %v4846_v32 = vld [vmem:[#allocation24_spill] sm:$0xff] }
  0xdf   : > { %v4836_v29 = vand.u32 4294901760, %v4835_v30  ;;  %654 = vmatmul.mubr.f32.gmra.mrb[8].mxu0 %v4839_v0  ;;  %1705 = vmatmul.mubr.f32.gmra.mrb[8].mxu1 %v4839_v0  ;;  %v2761_v40 = vpack.c.bf16 %v4738_v9, %v4808_v7  ;;  %v2571_v44 = vpack.c.bf16 %v4740_v57, %v4739_v13  ;;  %v2763_v11 = vpack.c.bf16 %v3523_v1, %v4741_v21  ;;  %v4843_v21 = vld [vmem:[#allocation17_spill] sm:$0xff]  ;;  %v4849_v8 = vld [vmem:[#allocation26_spill] sm:$0xff]  ;;  %v4850_v14 = vld [vmem:[#allocation27_spill] sm:$0xff] }
  0xe0   : > { %2568 = vmatprep.subr.bf16.mxu0 %v2567_v60  ;;  %2760 = vmatprep.subr.bf16.mxu1 %v2759_v37  ;;  %v2573_v31 = vpack.c.bf16 %v3529_v39, %v4817_v43  ;;  %v2765_v9 = vpack.c.bf16 %v3535_v3, %v3533_v55  ;;  %v2575_v57 = vpack.c.bf16 %v4825_v36, %v3541_v33  ;;  %v4840_v55 = vld [vmem:[#allocation11_spill] sm:$0xff]  ;;  %v4842_v33 = vld [vmem:[#allocation82_spill] sm:$0xff]  ;;  %v4848_v6 = vld [vmem:[#allocation25_spill] sm:$0xff] }
  0xe1   : > { %v4107_v61 = vpack.c.bf16 %v4838_v15, %v4836_v29  ;;  %788 = vmatprep.mubr.f32.mxu0 %v4719_v20  ;;  %1839 = vmatprep.mubr.f32.mxu1 %v4719_v20  ;;  %v2767_v1 = vpack.c.bf16 %v4829_v22, %v4827_v58  ;;  %v2577_v13 = vpack.c.bf16 %v4833_v59, %v4831_v51  ;;  %v4841_v3 = vld [vmem:[#allocation15_spill] sm:$0xff]  ;;  %v4851_v35 = vld [vmem:[#allocation28_spill] sm:$0xff]  ;;  %v4854_v43 = vld [vmem:[#allocation30_spill] sm:$0xff] }
  0xe2   : > { %2570 = vmatpush1.bf16.msra.mxu0 %v2569_v10  ;;  %2762 = vmatpush1.bf16.msra.mxu1 %v2761_v40  ;;  %v2769_v39 = vpack.c.bf16 %v4837_v52, %v4835_v30  ;;  %v4845_v59 = vld [vmem:[#allocation23_spill] sm:$0xff]  ;;  %v4853_v52 = vld [vmem:[#allocation29_spill] sm:$0xff]  ;;  %v4856_v30 = vld [vmem:[#allocation32_spill] sm:$0xff] }
  0xe3   : > { %2572 = vmatprep.subr.bf16.mxu0 %v2571_v44  ;;  %2764 = vmatprep.subr.bf16.mxu1 %v2763_v11  ;;  %v4852_v7 = vld [vmem:[#allocation87_spill] sm:$0xff]  ;;  %v4858_v58 = vld [vmem:[#allocation34_spill] sm:$0xff]  ;;  %v4862_v15 = vld [vmem:[#allocation89_spill] sm:$0xff] }
  0xe4   : > { %v4855_v29 = vld [vmem:[#allocation31_spill] sm:$0xff]  ;;  %v4860_v51 = vld [vmem:[#allocation38_spill] sm:$0xff]  ;;  %v4863_v46 = vld [vmem:[#allocation44_spill] sm:$0xff] }
  0xe5   : > { %v4857_v36 = vld [vmem:[#allocation63_spill] sm:$0xff]  ;;  %v4861_v41 = vld [vmem:[#allocation42_spill] sm:$0xff]  ;;  %v4867_v40 = vld [vmem:[#allocation56_spill] sm:$0xff] }
  0xe6   : > { %2574 = vmatpush1.bf16.msra.mxu0 %v2573_v31  ;;  %2766 = vmatpush1.bf16.msra.mxu1 %v2765_v9  ;;  %v4859_v22 = vld [vmem:[#allocation35_spill] sm:$0xff]  ;;  %v4865_v37 = vld [vmem:[#allocation50_spill] sm:$0xff] }
  0xe7   : > { %2576 = vmatprep.subr.bf16.mxu0 %v2575_v57  ;;  %2768 = vmatprep.subr.bf16.mxu1 %v2767_v1  ;;  %v4864_v60 = vld [vmem:[#allocation47_spill] sm:$0xff]  ;;  %v4866_v10 = vld [vmem:[#allocation54_spill] sm:$0xff]  ;;  %v4872_v57 = vld [vmem:[#allocation69_spill] sm:$0xff] }
  0xe8   : > { %v4868_v44 = vld [vmem:[#allocation59_spill] sm:$0xff]  ;;  %v4869_v11 = vld [vmem:[#allocation62_spill] sm:$0xff] }
  0xe9   : > { %v4870_v31 = vld [vmem:[#allocation66_spill] sm:$0xff]  ;;  %v4871_v9 = vld [vmem:[#allocation67_spill] sm:$0xff] }
  0xea   : > { %2578 = vmatpush1.bf16.msra.mxu0 %v2577_v13  ;;  %2770 = vmatpush1.bf16.msra.mxu1 %v2769_v39  ;;  %v4873_v1 = vld [vmem:[#allocation70_spill] sm:$0xff]  ;;  %v4874_v13 = vld [vmem:[#allocation12_spill] sm:$0xff] }
  0xeb   : > { %2580 = vmatprep.subr.bf16.mxu0 %v4840_v55  ;;  %2772 = vmatprep.subr.bf16.mxu1 %v4841_v3  ;;  %v4875_v39 = vand.u32 4294901760, %v4874_v13  ;;  %v4889_v13 = vld [vmem:[#allocation21_spill] sm:$0xff] }
  0xed   : > { %791 = vmatmul.mubr.f32.vlgmr.msra.gmra.mrb[0].mxu0 %v4842_v33  ;;  %1842 = vmatmul.mubr.f32.vlgmr.msra.gmra.mrb[0].mxu1 %v4842_v33  ;;  %v4876_v33 = vld [vmem:[#allocation13_spill] sm:$0xff] }
  0xee   : > { %2582 = vmatpush1.bf16.msra.mxu0 %v4843_v21  ;;  %2774 = vmatpush1.bf16.msra.mxu1 %v4844_v48 }
  0xef   : > { %2584 = vmatprep.subr.bf16.mxu0 %v4845_v59  ;;  %2776 = vmatprep.subr.bf16.mxu1 %v4846_v32 }
  0xf0   : > { %796 = vmatprep.mubr.f32.mxu0 %v4719_v20  ;;  %1847 = vmatprep.mubr.f32.mxu1 %v4719_v20 }
  0xf1   : > { %799 = vmatmul.mubr.f32.gmra.mrb[2].mxu0 %v4847_v62  ;;  %1850 = vmatmul.mubr.f32.gmra.mrb[2].mxu1 %v4847_v62  ;;  %v4877_v62 = vand.u32 4294901760, %v4876_v33  ;;  %v4890_v33 = vand.u32 4294901760, %v4889_v13 }
  0xf2   : > { %2586 = vmatpush1.bf16.msra.mxu0 %v4848_v6  ;;  %2778 = vmatpush1.bf16.msra.mxu1 %v4849_v8 }
  0xf3   : > { %2588 = vmatprep.subr.bf16.mxu0 %v4850_v14  ;;  %2780 = vmatprep.subr.bf16.mxu1 %v4851_v35 }
  0xf4   : > { %804 = vmatprep.mubr.f32.mxu0 %v4719_v20  ;;  %1855 = vmatprep.mubr.f32.mxu1 %v4719_v20 }
  0xf5   : > { %807 = vmatmul.mubr.f32.gmra.mrb[4].mxu0 %v4852_v7  ;;  %1858 = vmatmul.mubr.f32.gmra.mrb[4].mxu1 %v4852_v7  ;;  %v2611_v7 = vpack.c.bf16 %v4877_v62, %v4875_v39  ;;  %v4891_v39 = vld [vmem:[#allocation22_spill] sm:$0xff] }
  0xf6   : > { %2590 = vmatpush1.bf16.msra.mxu0 %v4853_v52  ;;  %2782 = vmatpush1.bf16.msra.mxu1 %v4854_v43  ;;  %v4892_v62 = vand.u32 4294901760, %v4891_v39 }
  0xf7   : > { %2592 = vmatprep.subr.bf16.mxu0 %v4855_v29  ;;  %2784 = vmatprep.subr.bf16.mxu1 %v4856_v30 }
  0xf8   : > { %812 = vmatprep.mubr.f32.mxu0 %v4719_v20  ;;  %1863 = vmatprep.mubr.f32.mxu1 %v4719_v20 }
  0xf9   : > { %815 = vmatmul.mubr.f32.gmra.mrb[6].mxu0 %v4857_v36  ;;  %1866 = vmatmul.mubr.f32.gmra.mrb[6].mxu1 %v4857_v36  ;;  %v4878_v36 = vld [vmem:[#allocation73_spill] sm:$0xff] }
  0xfa   : > { %2594 = vmatpush1.bf16.msra.mxu0 %v4858_v58  ;;  %2786 = vmatpush1.bf16.msra.mxu1 %v4859_v22 }
  0xfb   : > { %2596 = vmatprep.subr.bf16.mxu0 %v4860_v51  ;;  %2788 = vmatprep.subr.bf16.mxu1 %v4861_v41 }
  0xfc   : > { %820 = vmatprep.mubr.f32.mxu0 %v4719_v20  ;;  %1871 = vmatprep.mubr.f32.mxu1 %v4719_v20 }
  0xfd   : > { %823 = vmatmul.mubr.f32.gmra.mrb[8].mxu0 %v4862_v15  ;;  %1874 = vmatmul.mubr.f32.gmra.mrb[8].mxu1 %v4862_v15  ;;  %v4879_v15 = vld [vmem:[#allocation14_spill] sm:$0xff] }
  0xfe   : > { %2598 = vmatpush1.bf16.msra.mxu0 %v4863_v46  ;;  %2790 = vmatpush1.bf16.msra.mxu1 %v4864_v60  ;;  %v4886_v60 = vld [vmem:[#allocation19_spill] sm:$0xff] }
  0xff   : > { %2600 = vmatprep.subr.bf16.mxu0 %v4865_v37  ;;  %2792 = vmatprep.subr.bf16.mxu1 %v4866_v10  ;;  %v4883_v37 = vld [vmem:[#allocation75_spill] sm:$0xff] }
 0x100   : > { %925 = vmatprep.mubr.f32.mxu0 %v4719_v20  ;;  %1976 = vmatprep.mubr.f32.mxu1 %v4719_v20 }
 0x102   : > { %2602 = vmatpush1.bf16.msra.mxu0 %v4867_v40  ;;  %2794 = vmatpush1.bf16.msra.mxu1 %v4868_v44  ;;  %v4880_v40 = vand.u32 4294901760, %v4879_v15  ;;  %v4881_v44 = vld [vmem:[#allocation16_spill] sm:$0xff]  ;;  %v4893_v15 = vld [vmem:[#allocation83_spill] sm:$0xff] }
 0x103   : > { %2604 = vmatprep.subr.bf16.mxu0 %v4869_v11  ;;  %2796 = vmatprep.subr.bf16.mxu1 %v4870_v31  ;;  %v4882_v10 = vand.u32 4294901760, %v4881_v44  ;;  %v4884_v31 = vld [vmem:[#allocation18_spill] sm:$0xff] }
 0x105   : > { %v2803_v11 = vpack.c.bf16 %v4882_v10, %v4880_v40 }
 0x106   : > { %2606 = vmatpush1.bf16.msra.mxu0 %v4871_v9  ;;  %2798 = vmatpush1.bf16.msra.mxu1 %v4872_v57  ;;  %v4885_v9 = vand.u32 4294901760, %v4884_v31  ;;  %v4887_v57 = vand.u32 4294901760, %v4886_v60  ;;  %v4894_v60 = vld [vmem:[#allocation46_spill] sm:$0xff] }
 0x107   : > { %2608 = vmatprep.subr.bf16.mxu0 %v4873_v1  ;;  %2800 = vmatprep.subr.bf16.mxu1 %v4878_v36  ;;  %v4888_v1 = vld [vmem:[#allocation78_spill] sm:$0xff]  ;;  %v2805_v36 = vpack.c.bf16 %v4892_v62, %v4890_v33 }
 0x108   : > { %v2613_v46 = vpack.c.bf16 %v4887_v57, %v4885_v9 }
 0x10a   : > { %2610 = vmatpush1.bf16.msra.mxu0 %v4883_v37  ;;  %2802 = vmatpush1.bf16.msra.mxu1 %v4888_v1 }
 0x10b   : > { %2612 = vmatprep.subr.bf16.mxu0 %v2611_v7  ;;  %2804 = vmatprep.subr.bf16.mxu1 %v2803_v11 }
 0x10d   : > { %929 = vmatmul.mubr.f32.vlgmr.msra.gmra.mrb[0].mxu0 %v4893_v15  ;;  %1980 = vmatmul.mubr.f32.vlgmr.msra.gmra.mrb[0].mxu1 %v4893_v15 }
 0x10e   : > { %2614 = vmatpush1.bf16.msra.mxu0 %v2613_v46  ;;  %2806 = vmatpush1.bf16.msra.mxu1 %v2805_v36 }
 0x10f   : > { %2616 = vmatprep.subr.bf16.mxu0 %v3936_v2  ;;  %2808 = vmatprep.subr.bf16.mxu1 %v3943_v27  ;;  %v4895_v27 = vld [vmem:[#allocation88_spill] sm:$0xff]  ;;  %v4897_v2 = vld [vmem:[#allocation90_spill] sm:$0xff] }
 0x110   : > { %934 = vmatprep.mubr.f32.mxu0 %v4719_v20  ;;  %1985 = vmatprep.mubr.f32.mxu1 %v4719_v20 }
 0x111   : > { %938 = vmatmul.mubr.f32.gmra.mrb[2].mxu0 %v4894_v60  ;;  %1989 = vmatmul.mubr.f32.gmra.mrb[2].mxu1 %v4894_v60 }
 0x112   : > { %2618 = vmatpush1.bf16.msra.mxu0 %v3949_v16  ;;  %2810 = vmatpush1.bf16.msra.mxu1 %v3955_v38  ;;  %v4896_v16 = vld [vmem:[#allocation64_spill] sm:$0xff]  ;;  %v4898_v38 = vld [vmem:[#allocation33_spill] sm:$0xff] }
 0x113   : > { %2620 = vmatprep.subr.bf16.mxu0 %v3961_v25  ;;  %2812 = vmatprep.subr.bf16.mxu1 %v3967_v23  ;;  %v4899_v25 = vld [vmem:[#allocation36_spill] sm:$0xff]  ;;  %v4900_v23 = vld [vmem:[#allocation37_spill] sm:$0xff] }
 0x114   : > { %943 = vmatprep.mubr.f32.mxu0 %v4719_v20  ;;  %1994 = vmatprep.mubr.f32.mxu1 %v4719_v20 }
 0x115   : > { %947 = vmatmul.mubr.f32.gmra.mrb[4].mxu0 %v4895_v27  ;;  %1998 = vmatmul.mubr.f32.gmra.mrb[4].mxu1 %v4895_v27 }
 0x116   : > { %2622 = vmatpush1.bf16.msra.mxu0 %v3973_v56  ;;  %2814 = vmatpush1.bf16.msra.mxu1 %v3980_v4  ;;  %v4901_v56 = vld [vmem:[#allocation81_spill] sm:$0xff]  ;;  %v4902_v4 = vld [vmem:[#allocation84_spill] sm:$0xff] }
 0x117   : > { %2624 = vmatprep.subr.bf16.mxu0 %v3986_v19  ;;  %2816 = vmatprep.subr.bf16.mxu1 %v3992_v18  ;;  %v4903_v19 = vld [vmem:[#allocation86_spill] sm:$0xff]  ;;  %v4904_v18 = vld [vmem:[#allocation44_spill] sm:$0xff] }
 0x118   : > { %952 = vmatprep.mubr.f32.mxu0 %v4719_v20  ;;  %2003 = vmatprep.mubr.f32.mxu1 %v4719_v20 }
 0x119   : > { %956 = vmatmul.mubr.f32.gmra.mrb[6].mxu0 %v4896_v16  ;;  %2007 = vmatmul.mubr.f32.gmra.mrb[6].mxu1 %v4896_v16 }
 0x11a   : > { %2626 = vmatpush1.bf16.msra.mxu0 %v4000_v17  ;;  %2818 = vmatpush1.bf16.msra.mxu1 %v4006_v24  ;;  %v4905_v17 = vld [vmem:[#allocation47_spill] sm:$0xff]  ;;  %v4906_v24 = vld [vmem:[#allocation50_spill] sm:$0xff] }
 0x11b   : > { %2628 = vmatprep.subr.bf16.mxu0 %v4012_v5  ;;  %2820 = vmatprep.subr.bf16.mxu1 %v4019_v42  ;;  %v4907_v5 = vld [vmem:[#allocation54_spill] sm:$0xff]  ;;  %v4908_v42 = vld [vmem:[#allocation56_spill] sm:$0xff] }
 0x11c   : > { %961 = vmatprep.mubr.f32.mxu0 %v4719_v20  ;;  %2012 = vmatprep.mubr.f32.mxu1 %v4719_v20 }
 0x11d   : > { %965 = vmatmul.mubr.f32.gmra.mrb[8].mxu0 %v4897_v2  ;;  %2016 = vmatmul.mubr.f32.gmra.mrb[8].mxu1 %v4897_v2 }
 0x11e   : > { %2630 = vmatpush1.bf16.msra.mxu0 %v4025_v47  ;;  %2822 = vmatpush1.bf16.msra.mxu1 %v4031_v53  ;;  %v4909_v47 = vld [vmem:[#allocation59_spill] sm:$0xff]  ;;  %v4910_v53 = vld [vmem:[#allocation62_spill] sm:$0xff] }
 0x11f   : > { %2632 = vmatprep.subr.bf16.mxu0 %v4037_v63  ;;  %2824 = vmatprep.subr.bf16.mxu1 %v4043_v12  ;;  %v4911_v63 = vld [vmem:[#allocation66_spill] sm:$0xff]  ;;  %v4912_v12 = vld [vmem:[#allocation67_spill] sm:$0xff] }
 0x120   : > { %1131 = vmatprep.mubr.f32.mxu0 %v4719_v20  ;;  %2182 = vmatprep.mubr.f32.mxu1 %v4719_v20 }
 0x122   : > { %2634 = vmatpush1.bf16.msra.mxu0 %v4049_v45  ;;  %2826 = vmatpush1.bf16.msra.mxu1 %v4056_v54  ;;  %v4913_v45 = vld [vmem:[#allocation69_spill] sm:$0xff]  ;;  %v4914_v54 = vld [vmem:[#allocation70_spill] sm:$0xff] }
 0x123   : > { %2636 = vmatprep.subr.bf16.mxu0 %v4062_v34  ;;  %2828 = vmatprep.subr.bf16.mxu1 %v4898_v38  ;;  %v4915_v34 = vld [vmem:[#allocation73_spill] sm:$0xff] }
 0x126   : > { %2638 = vmatpush1.bf16.msra.mxu0 %v4899_v25  ;;  %2830 = vmatpush1.bf16.msra.mxu1 %v4900_v23 }
 0x127   : > { %2640 = vmatprep.subr.bf16.mxu0 %v4088_v50  ;;  %2832 = vmatprep.subr.bf16.mxu1 %v4095_v49 }
 0x12a   : > { %2642 = vmatpush1.bf16.msra.mxu0 %v4101_v26  ;;  %2834 = vmatpush1.bf16.msra.mxu1 %v4107_v61 }
 0x12b   : > { %2644 = vmatprep.subr.bf16.mxu0 %v4840_v55  ;;  %2836 = vmatprep.subr.bf16.mxu1 %v4841_v3 }
 0x12d   : > { %1133 = vmatmul.mubr.f32.vlgmr.msra.gmra.mrb[0].mxu0 %v4901_v56  ;;  %2184 = vmatmul.mubr.f32.vlgmr.msra.gmra.mrb[0].mxu1 %v4901_v56 }
 0x12e   : > { %2646 = vmatpush1.bf16.msra.mxu0 %v4843_v21  ;;  %2838 = vmatpush1.bf16.msra.mxu1 %v4844_v48 }
 0x12f   : > { %2648 = vmatprep.subr.bf16.mxu0 %v4845_v59  ;;  %2840 = vmatprep.subr.bf16.mxu1 %v4846_v32 }
 0x130   : > { %1138 = vmatprep.mubr.f32.mxu0 %v4719_v20  ;;  %2189 = vmatprep.mubr.f32.mxu1 %v4719_v20 }
 0x131   : > { %1140 = vmatmul.mubr.f32.gmra.mrb[2].mxu0 %v4902_v4  ;;  %2191 = vmatmul.mubr.f32.gmra.mrb[2].mxu1 %v4902_v4 }
 0x132   : > { %2650 = vmatpush1.bf16.msra.mxu0 %v4848_v6  ;;  %2842 = vmatpush1.bf16.msra.mxu1 %v4849_v8 }
 0x133   : > { %2652 = vmatprep.subr.bf16.mxu0 %v4850_v14  ;;  %2844 = vmatprep.subr.bf16.mxu1 %v4851_v35 }
 0x134   : > { %1145 = vmatprep.mubr.f32.mxu0 %v4719_v20  ;;  %2196 = vmatprep.mubr.f32.mxu1 %v4719_v20 }
 0x135   : > { %1147 = vmatmul.mubr.f32.gmra.mrb[4].mxu0 %v4903_v19  ;;  %2198 = vmatmul.mubr.f32.gmra.mrb[4].mxu1 %v4903_v19 }
 0x136   : > { %2654 = vmatpush1.bf16.msra.mxu0 %v4853_v52  ;;  %2846 = vmatpush1.bf16.msra.mxu1 %v4854_v43 }
 0x137   : > { %2656 = vmatprep.subr.bf16.mxu0 %v4855_v29  ;;  %2848 = vmatprep.subr.bf16.mxu1 %v4856_v30 }
 0x138   : > { %1152 = vmatprep.mubr.f32.mxu0 %v4719_v20  ;;  %2203 = vmatprep.mubr.f32.mxu1 %v4719_v20 }
 0x139   : > { %1154 = vmatmul.mubr.f32.gmra.mrb[6].mxu0 %v4816_v28  ;;  %2205 = vmatmul.mubr.f32.gmra.mrb[6].mxu1 %v4816_v28 }
 0x13a   : > { %2658 = vmatpush1.bf16.msra.mxu0 %v4858_v58  ;;  %2850 = vmatpush1.bf16.msra.mxu1 %v4859_v22 }
 0x13b   : > { %2660 = vmatprep.subr.bf16.mxu0 %v4860_v51  ;;  %2852 = vmatprep.subr.bf16.mxu1 %v4861_v41 }
 0x13c   : > { %1159 = vmatprep.mubr.f32.mxu0 %v4719_v20  ;;  %2210 = vmatprep.mubr.f32.mxu1 %v4719_v20 }
 0x13d   : > { %1161 = vmatmul.mubr.f32.gmra.mrb[8].mxu0 %v4839_v0  ;;  %2212 = vmatmul.mubr.f32.gmra.mrb[8].mxu1 %v4839_v0 }
 0x13e   : > { %2662 = vmatpush1.bf16.msra.mxu0 %v4904_v18  ;;  %2854 = vmatpush1.bf16.msra.mxu1 %v4905_v17 }
 0x13f   : > { %2664 = vmatprep.subr.bf16.mxu0 %v4906_v24  ;;  %2856 = vmatprep.subr.bf16.mxu1 %v4907_v5 }
 0x140   : > { %1263 = vmatprep.mubr.f32.mxu0 %v4719_v20  ;;  %2314 = vmatprep.mubr.f32.mxu1 %v4719_v20 }
 0x142   : > { %2666 = vmatpush1.bf16.msra.mxu0 %v4908_v42  ;;  %2858 = vmatpush1.bf16.msra.mxu1 %v4909_v47 }
 0x143   : > { %2668 = vmatprep.subr.bf16.mxu0 %v4910_v53  ;;  %2860 = vmatprep.subr.bf16.mxu1 %v4911_v63 }
 0x146   : > { %2670 = vmatpush1.bf16.msra.mxu0 %v4912_v12  ;;  %2862 = vmatpush1.bf16.msra.mxu1 %v4913_v45 }
 0x147   : > { %2672 = vmatprep.subr.bf16.mxu0 %v4914_v54  ;;  %2864 = vmatprep.subr.bf16.mxu1 %v4915_v34 }
 0x14a   : > { %2674 = vmatpush1.bf16.msra.mxu0 %v4883_v37  ;;  %2866 = vmatpush1.bf16.msra.mxu1 %v4888_v1 }
 0x14d   : > { %1265 = vmatmul.mubr.f32.vlgmr.msra.gmra.mrb[0].mxu0 %v4901_v56  ;;  %2316 = vmatmul.mubr.f32.vlgmr.msra.gmra.mrb[0].mxu1 %v4901_v56 }
 0x14e   : > { %1270 = vmatprep.mubr.f32.mxu0 %v4719_v20  ;;  %2321 = vmatprep.mubr.f32.mxu1 %v4719_v20 }
 0x151   : > { %1272 = vmatmul.mubr.f32.gmra.mrb[2].mxu0 %v4902_v4  ;;  %2323 = vmatmul.mubr.f32.gmra.mrb[2].mxu1 %v4902_v4 }
 0x152   : > { %1277 = vmatprep.mubr.f32.mxu0 %v4719_v20  ;;  %2328 = vmatprep.mubr.f32.mxu1 %v4719_v20 }
 0x155   : > { %1279 = vmatmul.mubr.f32.gmra.mrb[4].mxu0 %v4903_v19  ;;  %2330 = vmatmul.mubr.f32.gmra.mrb[4].mxu1 %v4903_v19 }
 0x156   : > { %1284 = vmatprep.mubr.f32.mxu0 %v4719_v20  ;;  %2335 = vmatprep.mubr.f32.mxu1 %v4719_v20 }
 0x159   : > { %1286 = vmatmul.mubr.f32.gmra.mrb[6].mxu0 %v4816_v28  ;;  %2337 = vmatmul.mubr.f32.gmra.mrb[6].mxu1 %v4816_v28 }
 0x15a   : > { %1291 = vmatprep.mubr.f32.mxu0 %v4719_v20  ;;  %2342 = vmatprep.mubr.f32.mxu1 %v4719_v20 }
 0x15d   : > { %1293 = vmatmul.mubr.f32.gmra.mrb[8].mxu0 %v4839_v0  ;;  %2344 = vmatmul.mubr.f32.gmra.mrb[8].mxu1 %v4839_v0 }
 0x220   : > { %v1266_v50 = vpop.f32.mrb[0].mxu0  ;;  %v2317_v28 = vpop.f32.mrb[0].mxu1 }
 0x221   : > { %2350 = vst [vmem:[%s4328_s17] sm:$0xff] %v1266_v50  ;;  %v1268_v20 = vpop.f32.mrb[1].mxu0  ;;  %2352 = vst [vmem:[%s4328_s17 + $0x10] sm:$0xff] %v2317_v28  ;;  %v2319_v49 = vpop.f32.mrb[1].mxu1 }
 0x222   : > { %2351 = vst [vmem:[%s4328_s17 + $0x8] sm:$0xff] %v1268_v20  ;;  %2353 = vst [vmem:[%s4328_s17 + $0x18] sm:$0xff] %v2319_v49 }
 0x224   : > { %v1273_v26 = vpop.f32.mrb[2].mxu0  ;;  %v2324_v61 = vpop.f32.mrb[2].mxu1 }
 0x225   : > { %2354 = vst [vmem:[%s4328_s17 + $0x20] sm:$0xff] %v1273_v26  ;;  %v1275_v0 = vpop.f32.mrb[3].mxu0  ;;  %2356 = vst [vmem:[%s4328_s17 + $0x30] sm:$0xff] %v2324_v61  ;;  %v2326_v55 = vpop.f32.mrb[3].mxu1 }
 0x226   : > { %2355 = vst [vmem:[%s4328_s17 + $0x28] sm:$0xff] %v1275_v0  ;;  %2357 = vst [vmem:[%s4328_s17 + $0x38] sm:$0xff] %v2326_v55 }
 0x228   : > { %v1280_v3 = vpop.f32.mrb[4].mxu0  ;;  %v2331_v21 = vpop.f32.mrb[4].mxu1 }
 0x229   : > { %2358 = vst [vmem:[%s4328_s17 + $0x40] sm:$0xff] %v1280_v3  ;;  %v1282_v48 = vpop.f32.mrb[5].mxu0  ;;  %2360 = vst [vmem:[%s4328_s17 + $0x50] sm:$0xff] %v2331_v21  ;;  %v2333_v59 = vpop.f32.mrb[5].mxu1 }
 0x22a   : > { %2359 = vst [vmem:[%s4328_s17 + $0x48] sm:$0xff] %v1282_v48  ;;  %2361 = vst [vmem:[%s4328_s17 + $0x58] sm:$0xff] %v2333_v59 }
 0x22c   : > { %v1287_v32 = vpop.f32.mrb[6].mxu0  ;;  %v2338_v6 = vpop.f32.mrb[6].mxu1 }
 0x22d   : > { %2362 = vst [vmem:[%s4328_s17 + $0x60] sm:$0xff] %v1287_v32  ;;  %v1289_v8 = vpop.f32.mrb[7].mxu0  ;;  %2364 = vst [vmem:[%s4328_s17 + $0x70] sm:$0xff] %v2338_v6  ;;  %v2340_v14 = vpop.f32.mrb[7].mxu1 }
 0x22e   : > { %2363 = vst [vmem:[%s4328_s17 + $0x68] sm:$0xff] %v1289_v8  ;;  %2365 = vst [vmem:[%s4328_s17 + $0x78] sm:$0xff] %v2340_v14 }
 0x230   : > { %v1294_v35 = vpop.f32.mrb[8].mxu0  ;;  %v2345_v52 = vpop.f32.mrb[8].mxu1 }
 0x231   : > { %2366 = vst [vmem:[%s4328_s17 + $0x80] sm:$0xff] %v1294_v35  ;;  %v1296_v43 = vpop.f32.mrb[9].mxu0  ;;  %2368 = vst [vmem:[%s4328_s17 + $0x90] sm:$0xff] %v2345_v52  ;;  %v2347_v29 = vpop.f32.mrb[9].mxu1 }
 0x232   : > { %2367 = vst [vmem:[%s4328_s17 + $0x88] sm:$0xff] %v1296_v43  ;;  %2369 = vst [vmem:[%s4328_s17 + $0x98] sm:$0xff] %v2347_v29 }
 0x233   : > { %3105 = shalt.err (!%p3102_p7)
}
 0x234   : > { %s3106_s24 = scalar_lea.hbm %s4351_s4, 2560  ;;  %s3110_s26 = scalar_lea.hbm %s4403_s2, 5120 }
 0x235   : > { %p3107_p9 = scmp.ne.s32.totalorder %s4351_s4, %s3106_s24  ;;  %p3111_p5 = scmp.lt.u32.totalorder %s4351_s4, %s4403_s2 }
 0x236   : > { %p3112_p11 = scmp.lt.u32.totalorder %s3110_s26, %s3106_s24  ;;  %p3114_p4 = scmp.lt.u32.totalorder %s3106_s24, %s4351_s4 }
 0x237   : > { %p3108_p2 = pnand %p3107_p9, %p3280_p12 }
 0x238   : > { %p3113_p1 = por %p3112_p11, %p3111_p5 }
 0x239   : > { %p3109_p0 = pneg %p3108_p2 }
 0x23a   : > { %p3115_p6 = por %p3114_p4, %p3113_p1 }
 0x23c   : > { %p3116_p8 = pnand %p3115_p6, %p3109_p0 }
 0x23e   : > { %3119 = shalt.err (!%p3116_p8)
}
 0x23f   : > { %s3172_s3 = smov 512   ;;  %s3173_s15 = smov 32  }
 0x240   : > { %2976 = dma.vmem_to_hbm [thread:$0]  (%p3280_p12), %s4353_s19, 2560, %s4351_s4, %s2371_s13, %s3172_s3, %s3172_s3, %s3173_s15  }
 0x241 PF: > { %s2400_s17 = sand.u32 1, %s3150_s9   ;;  %p4916_p10 = scmp.ne.s32.totalorder %s4636_s16, 0 }
 0x242   : > { %p4917_p13 = scmp.ge.s32.totalorder %s3162_s12, 2  ;;  %s2401_s27 = scalar_lea.sflag [#allocation4], %s2400_s17 }
 0x244   : > { %p2987_p3 = pnand %p4917_p13, %p4916_p10 }
 0x246   : > { %3145 = dma.done.wait (!%p2987_p3), %s2401_s27, 2560  }
 0x247   : > { %3147 = vsyncadd (!%p2987_p3), %s2401_s27, 4294964736  ;;  %p16_p7 = scmp.ge.s32.totalorder %s3245_s21, 4   ;;  %s4918_s9 = smov %s3154_s10 }
 0x248   : > { %s4919_s10 = smov %s3158_s11  ;;  %s4920_s11 = smov %s3276_s8 }
 0x249   : > { %s4921_s12 = smov %s3245_s21  ;;  %18 = sbr.rel (!%p16_p7) target bundleno = 6 (0x6), region = 77 }
 0x250   :  { %2406 = vsyncpa [#allocation3], 1 }
 0x251   :  { %2408 = vsyncpa [#allocation3 + $0x1], 1 }
 0x252   :  { %2409 = vsyncpa [#allocation6], 1 }
 0x253   :  { %2410 = vsyncpa [#allocation4], 1 }
 0x254   :  { %2412 = vsyncpa [#allocation4 + $0x1], 1 }

</bundles_post_ra>
